<compile_context>
chip_gen: v6e
topology: v6e:2x2x1
jax: 0.10.0
libtpu: 0.0.40
codegen_flags: <defaults>
</compile_context>

<pallas_src>
import math

import jax
import jax.numpy as jnp
from jax.experimental import pallas as pl
from jax.experimental.pallas import tpu as pltpu


# ----------------------------------------------------------------------------
# Small config.
# ----------------------------------------------------------------------------
INNER_DIM = 8
CHANNELS = [16, 32, 64, 64]
GRID3 = 4                      # grid_dims[3]; Conv1d output length = GRID3**2
BATCH = 2
SEQ_LEN = 256                  # (256 + 2*2 - 17)//16 + 1 == 16 == GRID3**2

# heads: (ch, k, stride, pad) for ConvTranspose2d(inner, ch//4, k, s, p)
#        -> GELU -> Conv2d(ch//4, ch, 3, 1, 1).   Note k == 2*stride always.
HEAD_CFG = [
    (CHANNELS[1], 8, 4, 2),    # output_adapters[1]
    (CHANNELS[1], 16, 8, 4),   # output_adapters[2]
    (CHANNELS[0], 16, 8, 4),   # output_adapters[3]
    (CHANNELS[0], 16, 8, 4),   # output_adapters[4]
    (CHANNELS[0], 16, 8, 4),   # output_adapters[5]
]

MXU_DTYPE = jnp.bfloat16       # operand dtype for the MXU GEMMs (f32 accum)


def _gelu(x):
    # exact erf GELU (torch.nn.GELU default)
    return 0.5 * x * (1.0 + jax.lax.erf(x * (1.0 / math.sqrt(2.0))))


# ----------------------------------------------------------------------------
# Pallas kernels.
# ----------------------------------------------------------------------------
def _stem_tiles_kernel(p_ref, ws_ref, bs_ref, wall_ref, o_ref):
    # Stem 3x3-conv GEMM (+bias); x_init stays in VMEM/vregs.
    # NOTE: the module has conv -> conv here (no GELU between a0's Conv2d and
    # the heads' ConvTranspose inputs) -- matched exactly.
    x = jnp.dot(p_ref[...], ws_ref[...], preferred_element_type=jnp.float32)
    x = (x + bs_ref[...]).astype(MXU_DTYPE)
    # One lane-dense GEMM producing ALL heads' ConvTranspose sub-pixel tiles
    # (N = sum of Cout1*k*k over heads = 5632).  Output bf16 (halved HBM bytes).
    o_ref[...] = jnp.dot(x, wall_ref[...],
                         preferred_element_type=jnp.float32).astype(o_ref.dtype)


def _head_gemm_kernel(w_ref, p_ref, b_ref, o_ref):
    # Transposed GEMM orientation: (N, K) @ (K, M_tile) so the output last dim
    # is 1024 (lane-dense, unmasked vst).  bf16 operands, f32 accumulation,
    # f32 bias epilogue.
    acc = jnp.dot(w_ref[...], p_ref[...], preferred_element_type=jnp.float32)
    o_ref[...] = (acc + b_ref[...]).astype(o_ref.dtype)


# ----------------------------------------------------------------------------
# Pallas-call wrappers.
# ----------------------------------------------------------------------------
def stem_and_tiles(p, ws, bs, w_all):
    """p: (M0, K0) stem im2col bf16; ws: (K0, C) bf16; bs: (C,) f32;
    w_all: (C, N_all) bf16.  Returns all heads' transposed-conv tiles
    (M0, N_all) bf16."""
    M0, K0 = p.shape
    _, C = ws.shape
    _, N_all = w_all.shape
    return pl.pallas_call(
        _stem_tiles_kernel,
        out_shape=jax.ShapeDtypeStruct((M0, N_all), MXU_DTYPE),
        grid=(1,),
        in_specs=[
            pl.BlockSpec((M0, K0), lambda i: (0, 0)),
            pl.BlockSpec((K0, C), lambda i: (0, 0)),
            pl.BlockSpec((1, C), lambda i: (0, 0)),
            pl.BlockSpec((C, N_all), lambda i: (0, 0)),
        ],
        out_specs=pl.BlockSpec((M0, N_all), lambda i: (0, 0)),
        compiler_params=pltpu.CompilerParams(dimension_semantics=("arbitrary",)),
    )(p, ws.astype(MXU_DTYPE), bs.reshape(1, C), w_all)


def head_gemm(w, p, b, *, m_tiles=2):
    """Block-diagonal heads-1..4 conv GEMM.
    w: (N, K) bf16; p: (K, M) bf16; b: (N, 1) f32.  Returns (N, M) f32.
    grid=(m_tiles,) over lane-dense M tiles, marked "parallel" so v7x's two
    TensorCores split the work; on single-TC v5e/v6e this is just 2 steps."""
    N, K = w.shape
    _, M = p.shape
    assert M % m_tiles == 0
    tm = M // m_tiles
    assert tm % 128 == 0
    return pl.pallas_call(
        _head_gemm_kernel,
        out_shape=jax.ShapeDtypeStruct((N, M), jnp.float32),
        grid=(m_tiles,),
        in_specs=[
            pl.BlockSpec((N, K), lambda m: (0, 0)),
            pl.BlockSpec((K, tm), lambda m: (0, m)),
            pl.BlockSpec((N, 1), lambda m: (0, 0)),
        ],
        out_specs=pl.BlockSpec((N, tm), lambda m: (0, m)),
        compiler_params=pltpu.CompilerParams(dimension_semantics=("parallel",)),
    )(w, p, b)


# ----------------------------------------------------------------------------
# Plain-JAX glue (layout only, fuses under jit): im2col and sub-pixel
# overlap-add for the transposed conv.
# ----------------------------------------------------------------------------
def _im2col_mk(a, pad):
    """a: (B, H, W, C) channels-last, 3x3/stride-1 -> (B*H*W, 9*C), K=(kh,kw,c)."""
    B, H, W, C = a.shape
    ap = jnp.pad(a, ((0, 0), (pad, pad), (pad, pad), (0, 0)))
    taps = [ap[:, i:i + H, j:j + W, :] for i in range(3) for j in range(3)]
    return jnp.stack(taps, axis=3).reshape(B * H * W, 9 * C)


def _im2col_km(a, pad):
    """a: (B, H, W, C) -> (9*C, B*H*W) with K=(kh,kw,c), M=(b,h,w)."""
    B, H, W, C = a.shape
    ap = jnp.pad(a, ((0, 0), (pad, pad), (pad, pad), (0, 0)))
    taps = [ap[:, i:i + H, j:j + W, :] for i in range(3) for j in range(3)]
    p = jnp.stack(taps, axis=0)                       # (9, B, H, W, C)
    return p.transpose(0, 4, 1, 2, 3).reshape(9 * C, B * H * W)


def _overlap_add(t, *, k, s, pad):
    """Sub-pixel reassembly of ConvTranspose2d from per-input-pixel tiles.
    t: (B, H, W, C1, k, k) f32, k == 2*s.  Returns (B, OH, OW, C1)."""
    assert k == 2 * s, "decomposition assumes kernel == 2 * stride"
    B, H, W, C1 = t.shape[:4]
    t = t.reshape(B, H, W, C1, 2, s, 2, s)
    yb = jnp.zeros((B, H + 1, W + 1, s, s, C1), t.dtype)
    for a in (0, 1):
        for c in (0, 1):
            contrib = t[:, :, :, :, a, :, c, :]               # (B,H,W,C1,s,s)
            contrib = contrib.transpose(0, 1, 2, 4, 5, 3)     # (B,H,W,s,s,C1)
            yb = yb.at[:, a:a + H, c:c + W].add(contrib)
    y = yb.transpose(0, 1, 3, 2, 4, 5).reshape(B, (H + 1) * s, (W + 1) * s, C1)
    oh = (H - 1) * s + k - 2 * pad
    return y[:, pad:pad + oh, pad:pad + oh, :]


# ----------------------------------------------------------------------------
# Adapter (small config), deterministic parameter init.
# ----------------------------------------------------------------------------
def init_params(key):
    def nrm(k, shape):
        return (0.05 * jax.random.normal(k, shape)).astype(jnp.float32)

    ks = iter(jax.random.split(key, 32))
    p = {
        "a0_w1": nrm(next(ks), (INNER_DIM, 1, 17)),       # Conv1d(1, inner, 17)
        "a0_b1": nrm(next(ks), (INNER_DIM,)),
        "a0_w2": nrm(next(ks), (INNER_DIM, INNER_DIM, 3, 3)),  # Conv2d(inner, inner, 3)
        "a0_b2": nrm(next(ks), (INNER_DIM,)),
        "heads": [],
    }
    for ch, k, _, _ in HEAD_CFG:
        cm = ch // 4
        p["heads"].append({
            "wt": nrm(next(ks), (INNER_DIM, cm, k, k)),   # ConvTranspose2d weight
            "bt": nrm(next(ks), (cm,)),
            "wc": nrm(next(ks), (ch, cm, 3, 3)),          # Conv2d weight
            "bc": nrm(next(ks), (ch,)),
        })
    return p


def adapter_forward(params, x):
    """x: (B, 1, L) float32. Returns (None, None, [5 NCHW feature maps])."""
    B = x.shape[0]
    g = GRID3
    OL = g * g

    # -- stem Conv1d(1, inner, 17, s=16, p=2) + GELU: plain XLA (sub-floor GEMM)
    xp = jnp.pad(x[:, 0, :], ((0, 0), (2, 2)))                         # (B, L+4)
    cols = jnp.stack([xp[:, j:j + 16 * OL:16] for j in range(17)], axis=-1)
    p1 = cols.reshape(B * OL, 17)                                      # (32, 17)
    w1 = params["a0_w1"].reshape(INNER_DIM, 17)
    h = _gelu(p1 @ w1.T + params["a0_b1"])                             # (32, 8)
    h = h.reshape(B, g, g, INNER_DIM)                                  # channels-last

    # -- stem 3x3 conv fused with ALL heads' sub-pixel ConvTranspose GEMMs -----
    wt_mats = [hd["wt"].reshape(INNER_DIM, -1) for hd in params["heads"]]
    n_cols = [int(m.shape[1]) for m in wt_mats]        # Cout1*k*k per head
    w_all = jnp.concatenate(wt_mats, axis=1).astype(MXU_DTYPE)          # (8, 5632)
    p_stem = _im2col_mk(h, pad=1).astype(MXU_DTYPE)                     # (32, 72)
    ws = params["a0_w2"].transpose(2, 3, 1, 0).reshape(9 * INNER_DIM, INNER_DIM)
    tiles_all = stem_and_tiles(p_stem, ws, params["a0_b2"], w_all)      # (32,5632) bf16  [Pallas #1]

    # -- head 0 (k=8): overlap-add + bias + GELU + 3x3 conv (sub-floor, XLA) ---
    ch0, k0, s0, pad0 = HEAD_CFG[0]
    hd0 = params["heads"][0]
    c1_0 = hd0["wt"].shape[1]
    nc0 = n_cols[0]
    t0 = tiles_all[:, :nc0].astype(jnp.float32).reshape(B, g, g, c1_0, k0, k0)
    y0 = _gelu(_overlap_add(t0, k=k0, s=s0, pad=pad0) + hd0["bt"])      # (B,16,16,8)
    H0 = y0.shape[1]
    p0 = _im2col_km(y0, pad=1)                                          # (72, 512)
    w0 = hd0["wc"].transpose(0, 2, 3, 1).reshape(ch0, 9 * c1_0)
    o0 = jnp.dot(w0, p0) + hd0["bc"][:, None]                           # (32, 512)
    out0 = o0.reshape(ch0, B, H0, H0).transpose(1, 0, 2, 3)             # NCHW

    # -- heads 1..4 (same k/s/pad): combined channels-last path ----------------
    _, k1, s1, pad1 = HEAD_CFG[1]
    heads14 = params["heads"][1:]
    c1s = [hd["wt"].shape[1] for hd in heads14]        # [8, 4, 4, 4]
    chs = [cfg[0] for cfg in HEAD_CFG[1:]]             # [32, 16, 16, 16]
    c_tot = sum(c1s)                                   # 20
    n_tot = sum(chs)                                   # 80

    parts, off = [], nc0
    for c1 in c1s:
        nc = c1 * k1 * k1
        parts.append(tiles_all[:, off:off + nc].astype(jnp.float32)
                     .reshape(B, g, g, c1, k1, k1))
        off += nc
    tc = jnp.concatenate(parts, axis=3)                # (B, g, g, 20, 16, 16)
    bt14 = jnp.concatenate([hd["bt"] for hd in heads14])               # (20,)
    y14 = _gelu(_overlap_add(tc, k=k1, s=s1, pad=pad1) + bt14)          # (B,32,32,20)
    H1 = y14.shape[1]
    p14 = _im2col_km(y14, pad=1).astype(MXU_DTYPE)                      # (180, 2048)

    # block-diagonal weight across heads 1..4; K order = (kh,kw,c_combined).
    # Off-diagonal zeros are exact (contribute nothing) and live only in the
    # tiny weight, never in the activation DMA.
    wblocks, c_off = [], 0
    for hd, ch, c1 in zip(heads14, chs, c1s):
        wk = hd["wc"].transpose(0, 2, 3, 1).reshape(ch, 9, c1)
        wk = jnp.pad(wk, ((0, 0), (0, 0), (c_off, c_tot - c_off - c1)))
        wblocks.append(wk)
        c_off += c1
    wb = jnp.concatenate(wblocks, axis=0).reshape(n_tot, 9 * c_tot).astype(MXU_DTYPE)
    bb = jnp.concatenate([hd["bc"] for hd in heads14]).reshape(n_tot, 1)

    o14 = head_gemm(wb, p14, bb, m_tiles=2)            # (80, 2048) f32  [Pallas #2]

    outs = [out0]
    n_off = 0
    for ch in chs:
        o = o14[n_off:n_off + ch].reshape(ch, B, H1, H1).transpose(1, 0, 2, 3)
        outs.append(o)                                 # NCHW (match PyTorch)
        n_off += ch
    return (None, None, outs)


if __name__ == "__main__":
    key = jax.random.PRNGKey(0)
    pkey, xkey = jax.random.split(key)
    params = init_params(pkey)
    x = jax.random.normal(xkey, (BATCH, 1, SEQ_LEN), dtype=jnp.float32)

    fwd = jax.jit(adapter_forward)
    _, _, feats = fwd(params, x)
    feats = jax.block_until_ready(feats)

    expected = [
        (BATCH, CHANNELS[1], 16, 16),
        (BATCH, CHANNELS[1], 32, 32),
        (BATCH, CHANNELS[0], 32, 32),
        (BATCH, CHANNELS[0], 32, 32),
        (BATCH, CHANNELS[0], 32, 32),
    ]
    assert [tuple(f.shape) for f in feats] == expected, \
        [tuple(f.shape) for f in feats]
    assert all(bool(jnp.isfinite(f).all()) for f in feats)
    print("KERNEL_OK")
</pallas_src>

<mosaic_0001>
module attributes {stable_mosaic.version = 11 : i64} {
  func.func @_stem_tiles_kernel(%arg0: i32, %arg1: memref<32x72xbf16, #tpu.memory_space<vmem>>, %arg2: memref<72x8xbf16, #tpu.memory_space<vmem>>, %arg3: memref<1x8xf32, #tpu.memory_space<vmem>>, %arg4: memref<8x5632xbf16, #tpu.memory_space<vmem>>, %arg5: memref<32x5632xbf16, #tpu.memory_space<vmem>>) attributes {dimension_semantics = [#tpu.dimension_semantics<arbitrary>], iteration_bounds = array<i64: 1>, scalar_prefetch = 0 : i64, scratch_operands = 0 : i64, tpu.core_type = #tpu.core_type<tc>, window_params = [{pipeline_mode = #tpu.pipeline_mode<synchronous>, transform_indices = @transform_0, window_bounds = array<i64: 32, 72>}, {pipeline_mode = #tpu.pipeline_mode<synchronous>, transform_indices = @transform_1, window_bounds = array<i64: 72, 8>}, {pipeline_mode = #tpu.pipeline_mode<synchronous>, transform_indices = @transform_2, window_bounds = array<i64: 1, 8>}, {pipeline_mode = #tpu.pipeline_mode<synchronous>, transform_indices = @transform_3, window_bounds = array<i64: 8, 5632>}, {pipeline_mode = #tpu.pipeline_mode<synchronous>, transform_indices = @transform_4, window_bounds = array<i64: 32, 5632>}]} {
    %c0 = arith.constant 0 : index
    %c0_0 = arith.constant 0 : index
    %0 = vector.load %arg1[%c0, %c0_0] : memref<32x72xbf16, #tpu.memory_space<vmem>>, vector<32x72xbf16>
    %c0_1 = arith.constant 0 : index
    %c0_2 = arith.constant 0 : index
    %1 = vector.load %arg2[%c0_1, %c0_2] : memref<72x8xbf16, #tpu.memory_space<vmem>>, vector<72x8xbf16>
    %cst = arith.constant dense<0.000000e+00> : vector<32x8xf32>
    %2 = tpu.matmul %0, %1, %cst {dimension_numbers = #tpu.dot_dimension_numbers<[1], [0], [0], [1], [0, 0, 1, 1], [], []>} : vector<32x72xbf16>, vector<72x8xbf16>, vector<32x8xf32> -> vector<32x8xf32>
    %c0_3 = arith.constant 0 : index
    %c0_4 = arith.constant 0 : index
    %3 = vector.load %arg3[%c0_3, %c0_4] : memref<1x8xf32, #tpu.memory_space<vmem>>, vector<1x8xf32>
    %4 = vector.broadcast %3 : vector<1x8xf32> to vector<32x8xf32>
    %5 = arith.addf %2, %4 : vector<32x8xf32>
    %6 = arith.truncf %5 : vector<32x8xf32> to vector<32x8xbf16>
    %c0_5 = arith.constant 0 : index
    %c0_6 = arith.constant 0 : index
    %7 = vector.load %arg4[%c0_5, %c0_6] : memref<8x5632xbf16, #tpu.memory_space<vmem>>, vector<8x5632xbf16>
    %cst_7 = arith.constant dense<0.000000e+00> : vector<32x5632xf32>
    %8 = tpu.matmul %6, %7, %cst_7 {dimension_numbers = #tpu.dot_dimension_numbers<[1], [0], [0], [1], [0, 0, 1, 1], [], []>} : vector<32x8xbf16>, vector<8x5632xbf16>, vector<32x5632xf32> -> vector<32x5632xf32>
    %9 = arith.truncf %8 : vector<32x5632xf32> to vector<32x5632xbf16>
    %c0_8 = arith.constant 0 : index
    %c0_9 = arith.constant 0 : index
    %10 = vector.load %arg5[%c0_8, %c0_9] : memref<32x5632xbf16, #tpu.memory_space<vmem>>, vector<32x5632xbf16>
    tpu.vector_store %arg5[%c0_8, %c0_9], %9 {strides = array<i32>} : memref<32x5632xbf16, #tpu.memory_space<vmem>>, vector<32x5632xbf16>,
    return
  }
  func.func @transform_0(%arg0: i32) -> (i32, i32) {
    %c0_i32 = arith.constant 0 : i32
    %c0_i32_0 = arith.constant 0 : i32
    %c0_i32_1 = arith.constant 0 : i32
    return %c0_i32, %c0_i32_0 : i32, i32
  }
  func.func @transform_1(%arg0: i32) -> (i32, i32) {
    %c0_i32 = arith.constant 0 : i32
    %c0_i32_0 = arith.constant 0 : i32
    %c0_i32_1 = arith.constant 0 : i32
    return %c0_i32, %c0_i32_0 : i32, i32
  }
  func.func @transform_2(%arg0: i32) -> (i32, i32) {
    %c0_i32 = arith.constant 0 : i32
    %c0_i32_0 = arith.constant 0 : i32
    %c0_i32_1 = arith.constant 0 : i32
    return %c0_i32, %c0_i32_0 : i32, i32
  }
  func.func @transform_3(%arg0: i32) -> (i32, i32) {
    %c0_i32 = arith.constant 0 : i32
    %c0_i32_0 = arith.constant 0 : i32
    %c0_i32_1 = arith.constant 0 : i32
    return %c0_i32, %c0_i32_0 : i32, i32
  }
  func.func @transform_4(%arg0: i32) -> (i32, i32) {
    %c0_i32 = arith.constant 0 : i32
    %c0_i32_0 = arith.constant 0 : i32
    %c0_i32_1 = arith.constant 0 : i32
    return %c0_i32, %c0_i32_0 : i32, i32
  }
}

module attributes {stable_mosaic.version = 11 : i64} {
  func.func @_head_gemm_kernel(%arg0: i32, %arg1: memref<80x180xbf16, #tpu.memory_space<vmem>>, %arg2: memref<180x1024xbf16, #tpu.memory_space<vmem>>, %arg3: memref<80x1xf32, #tpu.memory_space<vmem>>, %arg4: memref<80x1024xf32, #tpu.memory_space<vmem>>) attributes {dimension_semantics = [#tpu.dimension_semantics<parallel>], iteration_bounds = array<i64: 2>, scalar_prefetch = 0 : i64, scratch_operands = 0 : i64, tpu.core_type = #tpu.core_type<tc>, window_params = [{pipeline_mode = #tpu.pipeline_mode<synchronous>, transform_indices = @transform_0, window_bounds = array<i64: 80, 180>}, {transform_indices = @transform_1, window_bounds = array<i64: 180, 1024>}, {pipeline_mode = #tpu.pipeline_mode<synchronous>, transform_indices = @transform_2, window_bounds = array<i64: 80, 1>}, {transform_indices = @transform_3, window_bounds = array<i64: 80, 1024>}]} {
    %c0 = arith.constant 0 : index
    %c0_0 = arith.constant 0 : index
    %0 = vector.load %arg1[%c0, %c0_0] : memref<80x180xbf16, #tpu.memory_space<vmem>>, vector<80x180xbf16>
    %c0_1 = arith.constant 0 : index
    %c0_2 = arith.constant 0 : index
    %1 = vector.load %arg2[%c0_1, %c0_2] : memref<180x1024xbf16, #tpu.memory_space<vmem>>, vector<180x1024xbf16>
    %cst = arith.constant dense<0.000000e+00> : vector<80x1024xf32>
    %2 = tpu.matmul %0, %1, %cst {dimension_numbers = #tpu.dot_dimension_numbers<[1], [0], [0], [1], [0, 0, 1, 1], [], []>} : vector<80x180xbf16>, vector<180x1024xbf16>, vector<80x1024xf32> -> vector<80x1024xf32>
    %c0_3 = arith.constant 0 : index
    %c0_4 = arith.constant 0 : index
    %3 = vector.load %arg3[%c0_3, %c0_4] : memref<80x1xf32, #tpu.memory_space<vmem>>, vector<80x1xf32>
    %4 = vector.broadcast %3 : vector<80x1xf32> to vector<80x1024xf32>
    %5 = arith.addf %2, %4 : vector<80x1024xf32>
    %c0_5 = arith.constant 0 : index
    %c0_6 = arith.constant 0 : index
    %6 = vector.load %arg4[%c0_5, %c0_6] : memref<80x1024xf32, #tpu.memory_space<vmem>>, vector<80x1024xf32>
    tpu.vector_store %arg4[%c0_5, %c0_6], %5 {strides = array<i32>} : memref<80x1024xf32, #tpu.memory_space<vmem>>, vector<80x1024xf32>,
    return
  }
  func.func @transform_0(%arg0: i32) -> (i32, i32) {
    %c0_i32 = arith.constant 0 : i32
    %c0_i32_0 = arith.constant 0 : i32
    %c0_i32_1 = arith.constant 0 : i32
    return %c0_i32, %c0_i32_0 : i32, i32
  }
  func.func @transform_1(%arg0: i32) -> (i32, i32) {
    %c0_i32 = arith.constant 0 : i32
    %c0_i32_0 = arith.constant 0 : i32
    return %c0_i32, %arg0 : i32, i32
  }
  func.func @transform_2(%arg0: i32) -> (i32, i32) {
    %c0_i32 = arith.constant 0 : i32
    %c0_i32_0 = arith.constant 0 : i32
    %c0_i32_1 = arith.constant 0 : i32
    return %c0_i32, %c0_i32_0 : i32, i32
  }
  func.func @transform_3(%arg0: i32) -> (i32, i32) {
    %c0_i32 = arith.constant 0 : i32
    %c0_i32_0 = arith.constant 0 : i32
    return %c0_i32, %arg0 : i32, i32
  }
}

</mosaic_0001>

<bundles_post_ra>
// kernel: adapter_forward.2
= control target key start
LH: loop header
LB: loop body
LE: loop exit
PB: predicated region body
PF: predicated region fallthrough
CT: control target
= control target key end

     0   :  { %vm82_vm0 = vcmask 1043456   ;;  %vm75_vm1 = vcmask 588800   ;;  %v2564_v17 = vmov 0   ;;  %vm269_vm2 = vcmask 64512   ;;  %s3126_s1 = inlined_call_operand.vmem [shape: bf16[72,8], index: 1, kind: input, shape index: {}]   ;;  %s3127_s0 = inlined_call_operand.vmem [shape: bf16[32,72], index: 0, kind: input, shape index: {}]   ;;  %s3128_s3 = inlined_call_operand.vmem [shape: bf16[8,5632], index: 3, kind: input, shape index: {}]   ;;  %s3129_s2 = inlined_call_operand.vmem [shape: f32[1,8], index: 2, kind: input, shape index: {}]   ;;  %s3130_s4 = inlined_call_operand.vmem [shape: bf16[32,5632], index: 4, kind: output, shape index: {}]  }
   0x1   :  { %v2513_v0 = vld [vmem:[%s3126_s1 + $0x20] ss:$0 sps:$4 sm:$0xff]   ;;  %v2514_v1 = vld [vmem:[%s3126_s1 + $0x18] sm:$0xff]   ;;  %v2515_v3 = vld [vmem:[%s3126_s1 + $0x10] sm:$0xff]   ;;  %440 = vmatprep.mubr.bf16.mxu1 %v2564_v17 }
   0x2   :  { %2511 = vmatprep.subr.msk.bf16.mxu0 %vm82_vm0, %v2513_v0  ;;  %v84_v2 = vsel %vm82_vm0, %v2513_v0, 0  ;;  %v2518_v4 = vld [vmem:[%s3127_s0] sm:$0xff]   ;;  %v2516_v5 = vld [vmem:[%s3126_s1 + $0x8] sm:$0xff]   ;;  %v139_v9 = vld [vmem:[%s3128_s3 + $0x10] sm:$0xff] }
   0x3   :  { %2498 = vmatpush3.bf16.msra.mxu0 %v84_v2  ;;  %2507 = vmatprep.mubr.msk.bf16.mxu0 %vm75_vm1, %v2518_v4  ;;  %v2517_v6 = vld [vmem:[%s3126_s1] sm:$0xff]   ;;  %v2519_v7 = vld [vmem:[%s3127_s0 + $0x8] sm:$0xff]   ;;  %v2209_v12 = vcombine.high %v139_v9, %v139_v9  ;;  %v2208_v13 = vcombine.low %v139_v9, %v139_v9  ;;  %v140_v30 = vld [vmem:[%s3128_s3 + $0x18] sm:$0xff] }
   0x4   :  { %2499 = vmatprep.subr.bf16.mxu0 %v2514_v1  ;;  %v137_v8 = vld [vmem:[%s3128_s3] sm:$0xff]  ;;  %v138_v16 = vld [vmem:[%s3128_s3 + $0x8] sm:$0xff]  ;;  %v143_v31 = vld [vmem:[%s3128_s3 + $0x30] sm:$0xff]  ;;  %v2211_v35 = vcombine.high %v140_v30, %v140_v30  ;;  %v2210_v40 = vcombine.low %v140_v30, %v140_v30 }
   0x5   :  { %v2205_v10 = vcombine.high %v137_v8, %v137_v8  ;;  %v2204_v11 = vcombine.low %v137_v8, %v137_v8  ;;  %v289_v15 = vsel %vm82_vm0, %v2208_v13, 0  ;;  %v2207_v18 = vcombine.high %v138_v16, %v138_v16  ;;  %v141_v19 = vld [vmem:[%s3128_s3 + $0x20] sm:$0xff]  ;;  %v142_v42 = vld [vmem:[%s3128_s3 + $0x28] sm:$0xff]  ;;  %v144_v50 = vld [vmem:[%s3128_s3 + $0x38] sm:$0xff] }
   0x6   :  { %v2213_v20 = vcombine.high %v141_v19, %v141_v19  ;;  %v2206_v24 = vcombine.low %v138_v16, %v138_v16  ;;  %v2194_v25 = vld [vmem:[%s3129_s2] ss:$0 sm:$0xff]  ;;  %v2212_v27 = vcombine.low %v141_v19, %v141_v19  ;;  %v2217_v36 = vcombine.high %v143_v31, %v143_v31  ;;  %v147_v51 = vld [vmem:[%s3128_s3 + $0x50] sm:$0xff]  ;;  %v146_v58 = vld [vmem:[%s3128_s3 + $0x48] sm:$0xff] }
   0x7   :  { %2500 = vmatpush3.bf16.msra.mxu0 %v2514_v1  ;;  %2248 = vmatprep.subr.msk.bf16.mxu1 %vm82_vm0, %v2205_v10  ;;  %v277_v14 = vsel %vm82_vm0, %v2204_v11, 0  ;;  %v2216_v41 = vcombine.low %v143_v31, %v143_v31  ;;  %v145_v43 = vld [vmem:[%s3128_s3 + $0x40] sm:$0xff]  ;;  %v295_v44 = vsel %vm82_vm0, %v2210_v40, 0  ;;  %v2215_v46 = vcombine.high %v142_v42, %v142_v42  ;;  %v148_v2 = vld [vmem:[%s3128_s3 + $0x58] sm:$0xff]  ;;  %v150_v10 = vld [vmem:[%s3128_s3 + $0x68] sm:$0xff] }
   0x8   :  { %2501 = vmatprep.subr.bf16.mxu0 %v2515_v3  ;;  %423 = vmatpush1.bf16.msra.mxu1 %v277_v14  ;;  %v283_v33 = vsel %vm82_vm0, %v2206_v24, 0  ;;  %v301_v34 = vsel %vm82_vm0, %v2212_v27, 0  ;;  %v2221_v47 = vcombine.high %v145_v43, %v145_v43  ;;  %v2214_v48 = vcombine.low %v142_v42, %v142_v42  ;;  %v149_v59 = vld [vmem:[%s3128_s3 + $0x60] sm:$0xff]  ;;  %v152_v19 = vld [vmem:[%s3128_s3 + $0x78] sm:$0xff]  ;;  %v154_v27 = vld [vmem:[%s3128_s3 + $0x88] sm:$0xff] }
   0x9   :  { %2251 = vmatprep.subr.msk.bf16.mxu1 %vm82_vm0, %v2207_v18  ;;  %v313_v45 = vsel %vm82_vm0, %v2216_v41, 0  ;;  %v2220_v49 = vcombine.low %v145_v43, %v145_v43  ;;  %v2219_v54 = vcombine.high %v144_v50, %v144_v50  ;;  %v2225_v55 = vcombine.high %v147_v51, %v147_v51  ;;  %v153_v11 = vld [vmem:[%s3128_s3 + $0x80] sm:$0xff]  ;;  %v158_v42 = vld [vmem:[%s3128_s3 + $0xa8] sm:$0xff] }
   0xa   :  { %v307_v52 = vsel %vm82_vm0, %v2214_v48, 0  ;;  %v2218_v56 = vcombine.low %v144_v50, %v144_v50  ;;  %v2224_v57 = vcombine.low %v147_v51, %v147_v51  ;;  %v2223_v62 = vcombine.high %v146_v58, %v146_v58 }
   0xb   :  { %2502 = vmatpush3.bf16.msra.mxu0 %v2515_v3  ;;  %v325_v53 = vsel %vm82_vm0, %v2220_v49, 0  ;;  %v2229_v63 = vcombine.high %v149_v59, %v149_v59  ;;  %v2222_v0 = vcombine.low %v146_v58, %v146_v58  ;;  %v2228_v1 = vcombine.low %v149_v59, %v149_v59  ;;  %v151_v3 = vld [vmem:[%s3128_s3 + $0x70] sm:$0xff] }
   0xc   :  { %2503 = vmatprep.subr.bf16.mxu0 %v2516_v5  ;;  %v319_v60 = vsel %vm82_vm0, %v2218_v56, 0  ;;  %v337_v61 = vsel %vm82_vm0, %v2224_v57, 0  ;;  %v2226_v8 = vcombine.low %v148_v2, %v148_v2  ;;  %v2232_v9 = vcombine.low %v151_v3, %v151_v3 }
   0xd   :  { %v331_v4 = vsel %vm82_vm0, %v2222_v0, 0  ;;  %v2231_v14 = vcombine.high %v150_v10, %v150_v10  ;;  %v2230_v16 = vcombine.low %v150_v10, %v150_v10  ;;  %v2236_v18 = vcombine.low %v153_v11, %v153_v11 }
   0xe   :  { %v361_v13 = vsel %vm82_vm0, %v2232_v9, 0  ;;  %v2239_v31 = vcombine.high %v154_v27, %v154_v27 }
   0xf   :  { %2504 = vmatpush3.bf16.msra.mxu0 %v2516_v5  ;;  %v349_v5 = vsel %vm82_vm0, %v2228_v1, 0 }
  0x10   :  { %2505 = vmatprep.subr.bf16.mxu0 %v2517_v6 }
  0x13   :  { %2506 = vmatpush3.bf16.msra.mxu0 %v2517_v6  ;;  %v2227_v6 = vcombine.high %v148_v2, %v148_v2 }
  0x14   :  { %2254 = vmatprep.subr.msk.bf16.mxu0 %vm82_vm0, %v2209_v12  ;;  %v343_v12 = vsel %vm82_vm0, %v2226_v8, 0 }
  0x16   :  { %2508 = vmatmul.mubr.msk.bf16.vlgmr.msra.gmra.mxu0 %vm75_vm1, %v2519_v7  ;;  %v2233_v7 = vcombine.high %v151_v3, %v151_v3 }
  0x17   :  { %529 = vmatpush1.bf16.msra.mxu0 %v289_v15  ;;  %546 = vmatprep.mubr.bf16.mxu0 %v2564_v17  ;;  %v2237_v15 = vcombine.high %v153_v11, %v153_v11 }
  0x18   :  { %2260 = vmatprep.subr.msk.bf16.mxu0 %vm82_vm0, %v2213_v20  ;;  %v155_v20 = vld [vmem:[%s3128_s3 + $0x90] sm:$0xff] }
  0x19   :  { %v2241_v24 = vcombine.high %v155_v20, %v155_v20 }
  0xd6   :  { %v2509_v21 = vpop.f32.mrf.mxu0 }
  0xd7   :  { %v129_v38 = vadd.f32 %v2509_v21, %v2194_v25  ;;  %v355_v21 = vsel %vm82_vm0, %v2230_v16, 0 }
  0xd8   :  { %v120_v22 = vpop.f32.mrf.mxu0 }
  0xd9   :  { %v121_v28 = vadd.f32 %v2194_v25, %v120_v22  ;;  %v373_v22 = vsel %vm82_vm0, %v2236_v18, 0 }
  0xda   :  { %v2510_v23 = vpop.f32.mrf.mxu0 }
  0xdb   :  { %v132_v37 = vadd.f32 %v2510_v23, %v2194_v25  ;;  %v2235_v23 = vcombine.high %v152_v19, %v152_v19 }
  0xdc   :  { %v123_v26 = vpop.f32.mrf.mxu0 }
  0xdd   :  { %v124_v29 = vadd.f32 %v2194_v25, %v123_v26  ;;  %v2654_v39 = vpack.c.bf16 %v132_v37, %v129_v38  ;;  %v2234_v25 = vcombine.low %v152_v19, %v152_v19  ;;  %v2240_v26 = vcombine.low %v155_v20, %v155_v20 }
  0xdf   :  { %v2642_v32 = vpack.c.bf16 %v124_v29, %v121_v28  ;;  %v157_v28 = vld [vmem:[%s3128_s3 + $0xa0] sm:$0xff]  ;;  %v367_v29 = vsel %vm82_vm0, %v2234_v25, 0  ;;  %v385_v30 = vsel %vm82_vm0, %v2240_v26, 0 }
  0xe1   :  { %2249 = vmatmul.mubr.msk.bf16.vlgmr.msra.gmra.mxu1 %vm269_vm2, %v2642_v32  ;;  %2255 = vmatmul.mubr.msk.bf16.vlgmr.msra.gmra.mxu0 %vm269_vm2, %v2642_v32 }
  0xe2   :  { %476 = vmatpush1.bf16.msra.mxu1 %v283_v33  ;;  %450 = vmatprep.mubr.bf16.mxu1 %v2564_v17  ;;  %v2245_v33 = vcombine.high %v157_v28, %v157_v28 }
  0xe3   :  { %556 = vmatprep.mubr.bf16.mxu0 %v2564_v17  ;;  %635 = vmatpush1.bf16.msra.mxu0 %v301_v34  ;;  %v2238_v34 = vcombine.low %v154_v27, %v154_v27 }
  0xe4   :  { %2257 = vmatprep.subr.msk.bf16.mxu1 %vm82_vm0, %v2211_v35  ;;  %2266 = vmatprep.subr.msk.bf16.mxu0 %vm82_vm0, %v2217_v36  ;;  %v2244_v35 = vcombine.low %v157_v28, %v157_v28  ;;  %v156_v36 = vld [vmem:[%s3128_s3 + $0x98] sm:$0xff] }
  0xe5   :  { %v379_v37 = vsel %vm82_vm0, %v2238_v34, 0  ;;  %v2243_v40 = vcombine.high %v156_v36, %v156_v36  ;;  %v2242_v41 = vcombine.low %v156_v36, %v156_v36 }
  0xe6   :  { %v397_v38 = vsel %vm82_vm0, %v2244_v35, 0 }
  0xe7   :  { %v391_v43 = vsel %vm82_vm0, %v2242_v41, 0 }
  0xe9   :  { %2250 = vmatmul.mubr.msk.bf16.gmra.mxu1 %vm269_vm2, %v2654_v39  ;;  %2256 = vmatmul.mubr.msk.bf16.gmra.mxu0 %vm269_vm2, %v2654_v39 }
  0xea   :  { %493 = vmatprep.mubr.bf16.mxu1 %v2564_v17  ;;  %652 = vmatprep.mubr.bf16.mxu0 %v2564_v17 }
  0xf1   :  { %2252 = vmatmul.mubr.msk.bf16.vlgmr.msra.gmra.mxu1 %vm269_vm2, %v2642_v32  ;;  %2261 = vmatmul.mubr.msk.bf16.vlgmr.msra.gmra.mxu0 %vm269_vm2, %v2642_v32 }
  0xf2   :  { %582 = vmatpush1.bf16.msra.mxu1 %v295_v44  ;;  %503 = vmatprep.mubr.bf16.mxu1 %v2564_v17  ;;  %v2247_v44 = vcombine.high %v158_v42, %v158_v42 }
  0xf3   :  { %662 = vmatprep.mubr.bf16.mxu0 %v2564_v17  ;;  %741 = vmatpush1.bf16.msra.mxu0 %v313_v45  ;;  %v2246_v45 = vcombine.low %v158_v42, %v158_v42 }
  0xf4   :  { %2263 = vmatprep.subr.msk.bf16.mxu1 %vm82_vm0, %v2215_v46  ;;  %2272 = vmatprep.subr.msk.bf16.mxu0 %vm82_vm0, %v2221_v47 }
  0xf5   :  { %v403_v46 = vsel %vm82_vm0, %v2246_v45, 0 }
  0xf9   :  { %2253 = vmatmul.mubr.msk.bf16.gmra.mxu1 %vm269_vm2, %v2654_v39  ;;  %2262 = vmatmul.mubr.msk.bf16.gmra.mxu0 %vm269_vm2, %v2654_v39 }
  0xfa   :  { %599 = vmatprep.mubr.bf16.mxu1 %v2564_v17  ;;  %758 = vmatprep.mubr.bf16.mxu0 %v2564_v17 }
 0x101   :  { %2258 = vmatmul.mubr.msk.bf16.vlgmr.msra.gmra.mxu1 %vm269_vm2, %v2642_v32  ;;  %2267 = vmatmul.mubr.msk.bf16.vlgmr.msra.gmra.mxu0 %vm269_vm2, %v2642_v32 }
 0x102   :  { %688 = vmatpush1.bf16.msra.mxu1 %v307_v52  ;;  %609 = vmatprep.mubr.bf16.mxu1 %v2564_v17 }
 0x103   :  { %768 = vmatprep.mubr.bf16.mxu0 %v2564_v17  ;;  %847 = vmatpush1.bf16.msra.mxu0 %v325_v53 }
 0x104   :  { %2269 = vmatprep.subr.msk.bf16.mxu1 %vm82_vm0, %v2219_v54  ;;  %2278 = vmatprep.subr.msk.bf16.mxu0 %vm82_vm0, %v2225_v55 }
 0x109   :  { %2259 = vmatmul.mubr.msk.bf16.gmra.mxu1 %vm269_vm2, %v2654_v39  ;;  %2268 = vmatmul.mubr.msk.bf16.gmra.mxu0 %vm269_vm2, %v2654_v39 }
 0x10a   :  { %705 = vmatprep.mubr.bf16.mxu1 %v2564_v17  ;;  %864 = vmatprep.mubr.bf16.mxu0 %v2564_v17 }
 0x111   :  { %2264 = vmatmul.mubr.msk.bf16.vlgmr.msra.gmra.mxu1 %vm269_vm2, %v2642_v32  ;;  %2273 = vmatmul.mubr.msk.bf16.vlgmr.msra.gmra.mxu0 %vm269_vm2, %v2642_v32 }
 0x112   :  { %794 = vmatpush1.bf16.msra.mxu1 %v319_v60  ;;  %715 = vmatprep.mubr.bf16.mxu1 %v2564_v17 }
 0x113   :  { %874 = vmatprep.mubr.bf16.mxu0 %v2564_v17  ;;  %953 = vmatpush1.bf16.msra.mxu0 %v337_v61 }
 0x114   :  { %2275 = vmatprep.subr.msk.bf16.mxu1 %vm82_vm0, %v2223_v62  ;;  %2284 = vmatprep.subr.msk.bf16.mxu0 %vm82_vm0, %v2229_v63 }
 0x119   :  { %2265 = vmatmul.mubr.msk.bf16.gmra.mxu1 %vm269_vm2, %v2654_v39  ;;  %2274 = vmatmul.mubr.msk.bf16.gmra.mxu0 %vm269_vm2, %v2654_v39 }
 0x11a   :  { %811 = vmatprep.mubr.bf16.mxu1 %v2564_v17  ;;  %970 = vmatprep.mubr.bf16.mxu0 %v2564_v17 }
 0x121   :  { %2270 = vmatmul.mubr.msk.bf16.vlgmr.msra.gmra.mxu1 %vm269_vm2, %v2642_v32  ;;  %2279 = vmatmul.mubr.msk.bf16.vlgmr.msra.gmra.mxu0 %vm269_vm2, %v2642_v32 }
 0x122   :  { %900 = vmatpush1.bf16.msra.mxu1 %v331_v4  ;;  %821 = vmatprep.mubr.bf16.mxu1 %v2564_v17 }
 0x123   :  { %980 = vmatprep.mubr.bf16.mxu0 %v2564_v17  ;;  %1059 = vmatpush1.bf16.msra.mxu0 %v349_v5 }
 0x124   :  { %2281 = vmatprep.subr.msk.bf16.mxu1 %vm82_vm0, %v2227_v6  ;;  %2290 = vmatprep.subr.msk.bf16.mxu0 %vm82_vm0, %v2233_v7 }
 0x129   :  { %2271 = vmatmul.mubr.msk.bf16.gmra.mxu1 %vm269_vm2, %v2654_v39  ;;  %2280 = vmatmul.mubr.msk.bf16.gmra.mxu0 %vm269_vm2, %v2654_v39 }
 0x12a   :  { %917 = vmatprep.mubr.bf16.mxu1 %v2564_v17  ;;  %1076 = vmatprep.mubr.bf16.mxu0 %v2564_v17 }
 0x131   :  { %2276 = vmatmul.mubr.msk.bf16.vlgmr.msra.gmra.mxu1 %vm269_vm2, %v2642_v32  ;;  %2285 = vmatmul.mubr.msk.bf16.vlgmr.msra.gmra.mxu0 %vm269_vm2, %v2642_v32 }
 0x132   :  { %1006 = vmatpush1.bf16.msra.mxu1 %v343_v12  ;;  %927 = vmatprep.mubr.bf16.mxu1 %v2564_v17 }
 0x133   :  { %1086 = vmatprep.mubr.bf16.mxu0 %v2564_v17  ;;  %1165 = vmatpush1.bf16.msra.mxu0 %v361_v13 }
 0x134   :  { %2287 = vmatprep.subr.msk.bf16.mxu1 %vm82_vm0, %v2231_v14  ;;  %2296 = vmatprep.subr.msk.bf16.mxu0 %vm82_vm0, %v2237_v15 }
 0x139   :  { %2277 = vmatmul.mubr.msk.bf16.gmra.mxu1 %vm269_vm2, %v2654_v39  ;;  %2286 = vmatmul.mubr.msk.bf16.gmra.mxu0 %vm269_vm2, %v2654_v39 }
 0x13a   :  { %1023 = vmatprep.mubr.bf16.mxu1 %v2564_v17  ;;  %1182 = vmatprep.mubr.bf16.mxu0 %v2564_v17 }
 0x141   :  { %2282 = vmatmul.mubr.msk.bf16.vlgmr.msra.gmra.mxu1 %vm269_vm2, %v2642_v32  ;;  %2291 = vmatmul.mubr.msk.bf16.vlgmr.msra.gmra.mxu0 %vm269_vm2, %v2642_v32 }
 0x142   :  { %1112 = vmatpush1.bf16.msra.mxu1 %v355_v21  ;;  %1033 = vmatprep.mubr.bf16.mxu1 %v2564_v17 }
 0x143   :  { %1192 = vmatprep.mubr.bf16.mxu0 %v2564_v17  ;;  %1271 = vmatpush1.bf16.msra.mxu0 %v373_v22 }
 0x144   :  { %2293 = vmatprep.subr.msk.bf16.mxu1 %vm82_vm0, %v2235_v23  ;;  %2302 = vmatprep.subr.msk.bf16.mxu0 %vm82_vm0, %v2241_v24 }
 0x149   :  { %2283 = vmatmul.mubr.msk.bf16.gmra.mxu1 %vm269_vm2, %v2654_v39  ;;  %2292 = vmatmul.mubr.msk.bf16.gmra.mxu0 %vm269_vm2, %v2654_v39 }
 0x14a   :  { %1129 = vmatprep.mubr.bf16.mxu1 %v2564_v17  ;;  %1288 = vmatprep.mubr.bf16.mxu0 %v2564_v17 }
 0x151   :  { %2288 = vmatmul.mubr.msk.bf16.vlgmr.msra.gmra.mxu1 %vm269_vm2, %v2642_v32  ;;  %2297 = vmatmul.mubr.msk.bf16.vlgmr.msra.gmra.mxu0 %vm269_vm2, %v2642_v32 }
 0x152   :  { %1218 = vmatpush1.bf16.msra.mxu1 %v367_v29  ;;  %1139 = vmatprep.mubr.bf16.mxu1 %v2564_v17 }
 0x153   :  { %1298 = vmatprep.mubr.bf16.mxu0 %v2564_v17  ;;  %1377 = vmatpush1.bf16.msra.mxu0 %v385_v30 }
 0x154   :  { %2299 = vmatprep.subr.msk.bf16.mxu1 %vm82_vm0, %v2239_v31  ;;  %2308 = vmatprep.subr.msk.bf16.mxu0 %vm82_vm0, %v2245_v33 }
 0x159   :  { %2289 = vmatmul.mubr.msk.bf16.gmra.mxu1 %vm269_vm2, %v2654_v39  ;;  %2298 = vmatmul.mubr.msk.bf16.gmra.mxu0 %vm269_vm2, %v2654_v39 }
 0x15a   :  { %1235 = vmatprep.mubr.bf16.mxu1 %v2564_v17  ;;  %1394 = vmatprep.mubr.bf16.mxu0 %v2564_v17 }
 0x161   :  { %2294 = vmatmul.mubr.msk.bf16.vlgmr.msra.gmra.mxu1 %vm269_vm2, %v2642_v32  ;;  %2303 = vmatmul.mubr.msk.bf16.vlgmr.msra.gmra.mxu0 %vm269_vm2, %v2642_v32 }
 0x162   :  { %1324 = vmatpush1.bf16.msra.mxu1 %v379_v37  ;;  %1245 = vmatprep.mubr.bf16.mxu1 %v2564_v17 }
 0x163   :  { %1404 = vmatprep.mubr.bf16.mxu0 %v2564_v17  ;;  %1483 = vmatpush1.bf16.msra.mxu0 %v397_v38 }
 0x164   :  { %2305 = vmatprep.subr.msk.bf16.mxu1 %vm82_vm0, %v2243_v40 }
 0x169   :  { %2295 = vmatmul.mubr.msk.bf16.gmra.mxu1 %vm269_vm2, %v2654_v39  ;;  %2304 = vmatmul.mubr.msk.bf16.gmra.mxu0 %vm269_vm2, %v2654_v39 }
 0x16a   :  { %1341 = vmatprep.mubr.bf16.mxu1 %v2564_v17  ;;  %1500 = vmatprep.mubr.bf16.mxu0 %v2564_v17 }
 0x171   :  { %2300 = vmatmul.mubr.msk.bf16.vlgmr.msra.gmra.mxu1 %vm269_vm2, %v2642_v32  ;;  %2309 = vmatmul.mubr.msk.bf16.vlgmr.msra.gmra.mxu0 %vm269_vm2, %v2642_v32 }
 0x172   :  { %1430 = vmatpush1.bf16.msra.mxu1 %v391_v43  ;;  %1351 = vmatprep.mubr.bf16.mxu1 %v2564_v17 }
 0x173   :  { %1510 = vmatprep.mubr.bf16.mxu0 %v2564_v17  ;;  %2311 = vmatprep.subr.msk.bf16.mxu1 %vm82_vm0, %v2247_v44 }
 0x179   :  { %2301 = vmatmul.mubr.msk.bf16.gmra.mxu1 %vm269_vm2, %v2654_v39  ;;  %2310 = vmatmul.mubr.msk.bf16.gmra.mxu0 %vm269_vm2, %v2654_v39 }
 0x17a   :  { %1447 = vmatprep.mubr.bf16.mxu1 %v2564_v17 }
 0x181   :  { %2306 = vmatmul.mubr.msk.bf16.vlgmr.msra.gmra.mxu1 %vm269_vm2, %v2642_v32 }
 0x182   :  { %1536 = vmatpush1.bf16.msra.mxu1 %v403_v46  ;;  %1457 = vmatprep.mubr.bf16.mxu1 %v2564_v17 }
 0x189   :  { %2307 = vmatmul.mubr.msk.bf16.gmra.mxu1 %vm269_vm2, %v2654_v39 }
 0x18a   :  { %1553 = vmatprep.mubr.bf16.mxu1 %v2564_v17 }
 0x191   :  { %2312 = vmatmul.mubr.msk.bf16.vlgmr.msra.gmra.mxu1 %vm269_vm2, %v2642_v32 }
 0x192   :  { %1563 = vmatprep.mubr.bf16.mxu1 %v2564_v17 }
 0x199   :  { %2313 = vmatmul.mubr.msk.bf16.gmra.mxu1 %vm269_vm2, %v2654_v39 }
 0x1a1   :  { %v442_v47 = vpop.f32.mrf.mxu1  ;;  %v548_v48 = vpop.f32.mrf.mxu0 }
 0x1a3   :  { %v444_v49 = vpop.f32.mrf.mxu1  ;;  %v550_v50 = vpop.f32.mrf.mxu0 }
 0x1a4   :  { %v2402_v51 = vpack.c.bf16 %v444_v49, %v442_v47  ;;  %v2404_v52 = vpack.c.bf16 %v550_v50, %v548_v48 }
 0x1a5   :  { %v446_v53 = vpop.f32.mrf.mxu1  ;;  %v552_v54 = vpop.f32.mrf.mxu0 }
 0x1a6   :  { %2102 = vst [vmem:[%s3130_s4] sm:$0xff] %v2402_v51  ;;  %2104 = vst [vmem:[%s3130_s4 + $0x10] sm:$0xff] %v2404_v52 }
 0x1a7   :  { %v448_v17 = vpop.f32.mrf.mxu1  ;;  %v554_v32 = vpop.f32.mrf.mxu0 }
 0x1a8   :  { %v2424_v55 = vpack.c.bf16 %v448_v17, %v446_v53  ;;  %v2426_v39 = vpack.c.bf16 %v554_v32, %v552_v54 }
 0x1a9   :  { %v452_v56 = vpop.f32.mrf.mxu1  ;;  %v558_v57 = vpop.f32.mrf.mxu0 }
 0x1aa   :  { %2124 = vst [vmem:[%s3130_s4 + $0xb0] sm:$0xff] %v2424_v55  ;;  %2126 = vst [vmem:[%s3130_s4 + $0xc0] sm:$0xff] %v2426_v39 }
 0x1ab   :  { %v454_v58 = vpop.f32.mrf.mxu1  ;;  %v560_v59 = vpop.f32.mrf.mxu0 }
 0x1ac   :  { %v2446_v60 = vpack.c.bf16 %v454_v58, %v452_v56  ;;  %v2448_v61 = vpack.c.bf16 %v560_v59, %v558_v57 }
 0x1ad   :  { %v456_v62 = vpop.f32.mrf.mxu1  ;;  %v562_v63 = vpop.f32.mrf.mxu0 }
 0x1ae   :  { %2146 = vst [vmem:[%s3130_s4 + $0x160] sm:$0xff] %v2446_v60  ;;  %2148 = vst [vmem:[%s3130_s4 + $0x170] sm:$0xff] %v2448_v61 }
 0x1af   :  { %v458_v0 = vpop.f32.mrf.mxu1  ;;  %v564_v1 = vpop.f32.mrf.mxu0 }
 0x1b0   :  { %v2468_v2 = vpack.c.bf16 %v458_v0, %v456_v62  ;;  %v2470_v3 = vpack.c.bf16 %v564_v1, %v562_v63 }
 0x1b1   :  { %v495_v4 = vpop.f32.mrf.mxu1  ;;  %v654_v5 = vpop.f32.mrf.mxu0 }
 0x1b2   :  { %2168 = vst [vmem:[%s3130_s4 + $0x210] sm:$0xff] %v2468_v2  ;;  %2170 = vst [vmem:[%s3130_s4 + $0x220] sm:$0xff] %v2470_v3 }
 0x1b3   :  { %v497_v6 = vpop.f32.mrf.mxu1  ;;  %v656_v7 = vpop.f32.mrf.mxu0 }
 0x1b4   :  { %v2403_v8 = vpack.c.bf16 %v497_v6, %v495_v4  ;;  %v2406_v9 = vpack.c.bf16 %v656_v7, %v654_v5 }
 0x1b5   :  { %v499_v10 = vpop.f32.mrf.mxu1  ;;  %v658_v11 = vpop.f32.mrf.mxu0 }
 0x1b6   :  { %2103 = vst [vmem:[%s3130_s4 + $0x8] sm:$0xff] %v2403_v8  ;;  %2106 = vst [vmem:[%s3130_s4 + $0x20] sm:$0xff] %v2406_v9 }
 0x1b7   :  { %v501_v12 = vpop.f32.mrf.mxu1  ;;  %v660_v13 = vpop.f32.mrf.mxu0 }
 0x1b8   :  { %v2425_v14 = vpack.c.bf16 %v501_v12, %v499_v10  ;;  %v2428_v15 = vpack.c.bf16 %v660_v13, %v658_v11 }
 0x1b9   :  { %v505_v16 = vpop.f32.mrf.mxu1  ;;  %v664_v18 = vpop.f32.mrf.mxu0 }
 0x1ba   :  { %2125 = vst [vmem:[%s3130_s4 + $0xb8] sm:$0xff] %v2425_v14  ;;  %2128 = vst [vmem:[%s3130_s4 + $0xd0] sm:$0xff] %v2428_v15 }
 0x1bb   :  { %v507_v19 = vpop.f32.mrf.mxu1  ;;  %v666_v20 = vpop.f32.mrf.mxu0 }
 0x1bc   :  { %v2447_v21 = vpack.c.bf16 %v507_v19, %v505_v16  ;;  %v2450_v22 = vpack.c.bf16 %v666_v20, %v664_v18 }
 0x1bd   :  { %v509_v23 = vpop.f32.mrf.mxu1  ;;  %v668_v24 = vpop.f32.mrf.mxu0 }
 0x1be   :  { %2147 = vst [vmem:[%s3130_s4 + $0x168] sm:$0xff] %v2447_v21  ;;  %2150 = vst [vmem:[%s3130_s4 + $0x180] sm:$0xff] %v2450_v22 }
 0x1bf   :  { %v511_v25 = vpop.f32.mrf.mxu1  ;;  %v670_v26 = vpop.f32.mrf.mxu0 }
 0x1c0   :  { %v2469_v27 = vpack.c.bf16 %v511_v25, %v509_v23  ;;  %v2472_v28 = vpack.c.bf16 %v670_v26, %v668_v24 }
 0x1c1   :  { %v601_v29 = vpop.f32.mrf.mxu1  ;;  %v760_v30 = vpop.f32.mrf.mxu0 }
 0x1c2   :  { %2169 = vst [vmem:[%s3130_s4 + $0x218] sm:$0xff] %v2469_v27  ;;  %2172 = vst [vmem:[%s3130_s4 + $0x230] sm:$0xff] %v2472_v28 }
 0x1c3   :  { %v603_v31 = vpop.f32.mrf.mxu1  ;;  %v762_v33 = vpop.f32.mrf.mxu0 }
 0x1c4   :  { %v2405_v34 = vpack.c.bf16 %v603_v31, %v601_v29  ;;  %v2408_v35 = vpack.c.bf16 %v762_v33, %v760_v30 }
 0x1c5   :  { %v605_v36 = vpop.f32.mrf.mxu1  ;;  %v764_v37 = vpop.f32.mrf.mxu0 }
 0x1c6   :  { %2105 = vst [vmem:[%s3130_s4 + $0x18] sm:$0xff] %v2405_v34  ;;  %2108 = vst [vmem:[%s3130_s4 + $0x30] sm:$0xff] %v2408_v35 }
 0x1c7   :  { %v607_v38 = vpop.f32.mrf.mxu1  ;;  %v766_v40 = vpop.f32.mrf.mxu0 }
 0x1c8   :  { %v2427_v41 = vpack.c.bf16 %v607_v38, %v605_v36  ;;  %v2430_v42 = vpack.c.bf16 %v766_v40, %v764_v37 }
 0x1c9   :  { %v611_v43 = vpop.f32.mrf.mxu1  ;;  %v770_v44 = vpop.f32.mrf.mxu0 }
 0x1ca   :  { %2127 = vst [vmem:[%s3130_s4 + $0xc8] sm:$0xff] %v2427_v41  ;;  %2130 = vst [vmem:[%s3130_s4 + $0xe0] sm:$0xff] %v2430_v42 }
 0x1cb   :  { %v613_v45 = vpop.f32.mrf.mxu1  ;;  %v772_v46 = vpop.f32.mrf.mxu0 }
 0x1cc   :  { %v2449_v47 = vpack.c.bf16 %v613_v45, %v611_v43  ;;  %v2452_v48 = vpack.c.bf16 %v772_v46, %v770_v44 }
 0x1cd   :  { %v615_v49 = vpop.f32.mrf.mxu1  ;;  %v774_v50 = vpop.f32.mrf.mxu0 }
 0x1ce   :  { %2149 = vst [vmem:[%s3130_s4 + $0x178] sm:$0xff] %v2449_v47  ;;  %2152 = vst [vmem:[%s3130_s4 + $0x190] sm:$0xff] %v2452_v48 }
 0x1cf   :  { %v617_v51 = vpop.f32.mrf.mxu1  ;;  %v776_v52 = vpop.f32.mrf.mxu0 }
 0x1d0   :  { %v2471_v53 = vpack.c.bf16 %v617_v51, %v615_v49  ;;  %v2474_v54 = vpack.c.bf16 %v776_v52, %v774_v50 }
 0x1d1   :  { %v707_v17 = vpop.f32.mrf.mxu1  ;;  %v866_v32 = vpop.f32.mrf.mxu0 }
 0x1d2   :  { %2171 = vst [vmem:[%s3130_s4 + $0x228] sm:$0xff] %v2471_v53  ;;  %2174 = vst [vmem:[%s3130_s4 + $0x240] sm:$0xff] %v2474_v54 }
 0x1d3   :  { %v709_v55 = vpop.f32.mrf.mxu1  ;;  %v868_v39 = vpop.f32.mrf.mxu0 }
 0x1d4   :  { %v2407_v56 = vpack.c.bf16 %v709_v55, %v707_v17  ;;  %v2410_v57 = vpack.c.bf16 %v868_v39, %v866_v32 }
 0x1d5   :  { %v711_v58 = vpop.f32.mrf.mxu1  ;;  %v870_v59 = vpop.f32.mrf.mxu0 }
 0x1d6   :  { %2107 = vst [vmem:[%s3130_s4 + $0x28] sm:$0xff] %v2407_v56  ;;  %2110 = vst [vmem:[%s3130_s4 + $0x40] sm:$0xff] %v2410_v57 }
 0x1d7   :  { %v713_v60 = vpop.f32.mrf.mxu1  ;;  %v872_v61 = vpop.f32.mrf.mxu0 }
 0x1d8   :  { %v2429_v62 = vpack.c.bf16 %v713_v60, %v711_v58  ;;  %v2432_v63 = vpack.c.bf16 %v872_v61, %v870_v59 }
 0x1d9   :  { %v717_v0 = vpop.f32.mrf.mxu1  ;;  %v876_v1 = vpop.f32.mrf.mxu0 }
 0x1da   :  { %2129 = vst [vmem:[%s3130_s4 + $0xd8] sm:$0xff] %v2429_v62  ;;  %2132 = vst [vmem:[%s3130_s4 + $0xf0] sm:$0xff] %v2432_v63 }
 0x1db   :  { %v719_v2 = vpop.f32.mrf.mxu1  ;;  %v878_v3 = vpop.f32.mrf.mxu0 }
 0x1dc   :  { %v2451_v4 = vpack.c.bf16 %v719_v2, %v717_v0  ;;  %v2454_v5 = vpack.c.bf16 %v878_v3, %v876_v1 }
 0x1dd   :  { %v721_v6 = vpop.f32.mrf.mxu1  ;;  %v880_v7 = vpop.f32.mrf.mxu0 }
 0x1de   :  { %2151 = vst [vmem:[%s3130_s4 + $0x188] sm:$0xff] %v2451_v4  ;;  %2154 = vst [vmem:[%s3130_s4 + $0x1a0] sm:$0xff] %v2454_v5 }
 0x1df   :  { %v723_v8 = vpop.f32.mrf.mxu1  ;;  %v882_v9 = vpop.f32.mrf.mxu0 }
 0x1e0   :  { %v2473_v10 = vpack.c.bf16 %v723_v8, %v721_v6  ;;  %v2476_v11 = vpack.c.bf16 %v882_v9, %v880_v7 }
 0x1e1   :  { %v813_v12 = vpop.f32.mrf.mxu1  ;;  %v972_v13 = vpop.f32.mrf.mxu0 }
 0x1e2   :  { %2173 = vst [vmem:[%s3130_s4 + $0x238] sm:$0xff] %v2473_v10  ;;  %2176 = vst [vmem:[%s3130_s4 + $0x250] sm:$0xff] %v2476_v11 }
 0x1e3   :  { %v815_v14 = vpop.f32.mrf.mxu1  ;;  %v974_v15 = vpop.f32.mrf.mxu0 }
 0x1e4   :  { %v2409_v16 = vpack.c.bf16 %v815_v14, %v813_v12  ;;  %v2412_v18 = vpack.c.bf16 %v974_v15, %v972_v13 }
 0x1e5   :  { %v817_v19 = vpop.f32.mrf.mxu1  ;;  %v976_v20 = vpop.f32.mrf.mxu0 }
 0x1e6   :  { %2109 = vst [vmem:[%s3130_s4 + $0x38] sm:$0xff] %v2409_v16  ;;  %2112 = vst [vmem:[%s3130_s4 + $0x50] sm:$0xff] %v2412_v18 }
 0x1e7   :  { %v819_v21 = vpop.f32.mrf.mxu1  ;;  %v978_v22 = vpop.f32.mrf.mxu0 }
 0x1e8   :  { %v2431_v23 = vpack.c.bf16 %v819_v21, %v817_v19  ;;  %v2434_v24 = vpack.c.bf16 %v978_v22, %v976_v20 }
 0x1e9   :  { %v823_v25 = vpop.f32.mrf.mxu1  ;;  %v982_v26 = vpop.f32.mrf.mxu0 }
 0x1ea   :  { %2131 = vst [vmem:[%s3130_s4 + $0xe8] sm:$0xff] %v2431_v23  ;;  %2134 = vst [vmem:[%s3130_s4 + $0x100] sm:$0xff] %v2434_v24 }
 0x1eb   :  { %v825_v27 = vpop.f32.mrf.mxu1  ;;  %v984_v28 = vpop.f32.mrf.mxu0 }
 0x1ec   :  { %v2453_v29 = vpack.c.bf16 %v825_v27, %v823_v25  ;;  %v2456_v30 = vpack.c.bf16 %v984_v28, %v982_v26 }
 0x1ed   :  { %v827_v31 = vpop.f32.mrf.mxu1  ;;  %v986_v33 = vpop.f32.mrf.mxu0 }
 0x1ee   :  { %2153 = vst [vmem:[%s3130_s4 + $0x198] sm:$0xff] %v2453_v29  ;;  %2156 = vst [vmem:[%s3130_s4 + $0x1b0] sm:$0xff] %v2456_v30 }
 0x1ef   :  { %v829_v34 = vpop.f32.mrf.mxu1  ;;  %v988_v35 = vpop.f32.mrf.mxu0 }
 0x1f0   :  { %v2475_v36 = vpack.c.bf16 %v829_v34, %v827_v31  ;;  %v2478_v37 = vpack.c.bf16 %v988_v35, %v986_v33 }
 0x1f1   :  { %v919_v38 = vpop.f32.mrf.mxu1  ;;  %v1078_v40 = vpop.f32.mrf.mxu0 }
 0x1f2   :  { %2175 = vst [vmem:[%s3130_s4 + $0x248] sm:$0xff] %v2475_v36  ;;  %2178 = vst [vmem:[%s3130_s4 + $0x260] sm:$0xff] %v2478_v37 }
 0x1f3   :  { %v921_v41 = vpop.f32.mrf.mxu1  ;;  %v1080_v42 = vpop.f32.mrf.mxu0 }
 0x1f4   :  { %v2411_v43 = vpack.c.bf16 %v921_v41, %v919_v38  ;;  %v2414_v44 = vpack.c.bf16 %v1080_v42, %v1078_v40 }
 0x1f5   :  { %v923_v45 = vpop.f32.mrf.mxu1  ;;  %v1082_v46 = vpop.f32.mrf.mxu0 }
 0x1f6   :  { %2111 = vst [vmem:[%s3130_s4 + $0x48] sm:$0xff] %v2411_v43  ;;  %2114 = vst [vmem:[%s3130_s4 + $0x60] sm:$0xff] %v2414_v44 }
 0x1f7   :  { %v925_v47 = vpop.f32.mrf.mxu1  ;;  %v1084_v48 = vpop.f32.mrf.mxu0 }
 0x1f8   :  { %v2433_v49 = vpack.c.bf16 %v925_v47, %v923_v45  ;;  %v2436_v50 = vpack.c.bf16 %v1084_v48, %v1082_v46 }
 0x1f9   :  { %v929_v51 = vpop.f32.mrf.mxu1  ;;  %v1088_v52 = vpop.f32.mrf.mxu0 }
 0x1fa   :  { %2133 = vst [vmem:[%s3130_s4 + $0xf8] sm:$0xff] %v2433_v49  ;;  %2136 = vst [vmem:[%s3130_s4 + $0x110] sm:$0xff] %v2436_v50 }
 0x1fb   :  { %v931_v53 = vpop.f32.mrf.mxu1  ;;  %v1090_v54 = vpop.f32.mrf.mxu0 }
 0x1fc   :  { %v2455_v17 = vpack.c.bf16 %v931_v53, %v929_v51  ;;  %v2458_v32 = vpack.c.bf16 %v1090_v54, %v1088_v52 }
 0x1fd   :  { %v933_v55 = vpop.f32.mrf.mxu1  ;;  %v1092_v39 = vpop.f32.mrf.mxu0 }
 0x1fe   :  { %2155 = vst [vmem:[%s3130_s4 + $0x1a8] sm:$0xff] %v2455_v17  ;;  %2158 = vst [vmem:[%s3130_s4 + $0x1c0] sm:$0xff] %v2458_v32 }
 0x1ff   :  { %v935_v56 = vpop.f32.mrf.mxu1  ;;  %v1094_v57 = vpop.f32.mrf.mxu0 }
 0x200   :  { %v2477_v58 = vpack.c.bf16 %v935_v56, %v933_v55  ;;  %v2480_v59 = vpack.c.bf16 %v1094_v57, %v1092_v39 }
 0x201   :  { %v1025_v60 = vpop.f32.mrf.mxu1  ;;  %v1184_v61 = vpop.f32.mrf.mxu0 }
 0x202   :  { %2177 = vst [vmem:[%s3130_s4 + $0x258] sm:$0xff] %v2477_v58  ;;  %2180 = vst [vmem:[%s3130_s4 + $0x270] sm:$0xff] %v2480_v59 }
 0x203   :  { %v1027_v62 = vpop.f32.mrf.mxu1  ;;  %v1186_v63 = vpop.f32.mrf.mxu0 }
 0x204   :  { %v2413_v0 = vpack.c.bf16 %v1027_v62, %v1025_v60  ;;  %v2416_v1 = vpack.c.bf16 %v1186_v63, %v1184_v61 }
 0x205   :  { %v1029_v2 = vpop.f32.mrf.mxu1  ;;  %v1188_v3 = vpop.f32.mrf.mxu0 }
 0x206   :  { %2113 = vst [vmem:[%s3130_s4 + $0x58] sm:$0xff] %v2413_v0  ;;  %2116 = vst [vmem:[%s3130_s4 + $0x70] sm:$0xff] %v2416_v1 }
 0x207   :  { %v1031_v4 = vpop.f32.mrf.mxu1  ;;  %v1190_v5 = vpop.f32.mrf.mxu0 }
 0x208   :  { %v2435_v6 = vpack.c.bf16 %v1031_v4, %v1029_v2  ;;  %v2438_v7 = vpack.c.bf16 %v1190_v5, %v1188_v3 }
 0x209   :  { %v1035_v8 = vpop.f32.mrf.mxu1  ;;  %v1194_v9 = vpop.f32.mrf.mxu0 }
 0x20a   :  { %2135 = vst [vmem:[%s3130_s4 + $0x108] sm:$0xff] %v2435_v6  ;;  %2138 = vst [vmem:[%s3130_s4 + $0x120] sm:$0xff] %v2438_v7 }
 0x20b   :  { %v1037_v10 = vpop.f32.mrf.mxu1  ;;  %v1196_v11 = vpop.f32.mrf.mxu0 }
 0x20c   :  { %v2457_v12 = vpack.c.bf16 %v1037_v10, %v1035_v8  ;;  %v2460_v13 = vpack.c.bf16 %v1196_v11, %v1194_v9 }
 0x20d   :  { %v1039_v14 = vpop.f32.mrf.mxu1  ;;  %v1198_v15 = vpop.f32.mrf.mxu0 }
 0x20e   :  { %2157 = vst [vmem:[%s3130_s4 + $0x1b8] sm:$0xff] %v2457_v12  ;;  %2160 = vst [vmem:[%s3130_s4 + $0x1d0] sm:$0xff] %v2460_v13 }
 0x20f   :  { %v1041_v16 = vpop.f32.mrf.mxu1  ;;  %v1200_v18 = vpop.f32.mrf.mxu0 }
 0x210   :  { %v2479_v19 = vpack.c.bf16 %v1041_v16, %v1039_v14  ;;  %v2482_v20 = vpack.c.bf16 %v1200_v18, %v1198_v15 }
 0x211   :  { %v1131_v21 = vpop.f32.mrf.mxu1  ;;  %v1290_v22 = vpop.f32.mrf.mxu0 }
 0x212   :  { %2179 = vst [vmem:[%s3130_s4 + $0x268] sm:$0xff] %v2479_v19  ;;  %2182 = vst [vmem:[%s3130_s4 + $0x280] sm:$0xff] %v2482_v20 }
 0x213   :  { %v1133_v23 = vpop.f32.mrf.mxu1  ;;  %v1292_v24 = vpop.f32.mrf.mxu0 }
 0x214   :  { %v2415_v25 = vpack.c.bf16 %v1133_v23, %v1131_v21  ;;  %v2418_v26 = vpack.c.bf16 %v1292_v24, %v1290_v22 }
 0x215   :  { %v1135_v27 = vpop.f32.mrf.mxu1  ;;  %v1294_v28 = vpop.f32.mrf.mxu0 }
 0x216   :  { %2115 = vst [vmem:[%s3130_s4 + $0x68] sm:$0xff] %v2415_v25  ;;  %2118 = vst [vmem:[%s3130_s4 + $0x80] sm:$0xff] %v2418_v26 }
 0x217   :  { %v1137_v29 = vpop.f32.mrf.mxu1  ;;  %v1296_v30 = vpop.f32.mrf.mxu0 }
 0x218   :  { %v2437_v31 = vpack.c.bf16 %v1137_v29, %v1135_v27  ;;  %v2440_v33 = vpack.c.bf16 %v1296_v30, %v1294_v28 }
 0x219   :  { %v1141_v34 = vpop.f32.mrf.mxu1  ;;  %v1300_v35 = vpop.f32.mrf.mxu0 }
 0x21a   :  { %2137 = vst [vmem:[%s3130_s4 + $0x118] sm:$0xff] %v2437_v31  ;;  %2140 = vst [vmem:[%s3130_s4 + $0x130] sm:$0xff] %v2440_v33 }
 0x21b   :  { %v1143_v36 = vpop.f32.mrf.mxu1  ;;  %v1302_v37 = vpop.f32.mrf.mxu0 }
 0x21c   :  { %v2459_v38 = vpack.c.bf16 %v1143_v36, %v1141_v34  ;;  %v2462_v40 = vpack.c.bf16 %v1302_v37, %v1300_v35 }
 0x21d   :  { %v1145_v41 = vpop.f32.mrf.mxu1  ;;  %v1304_v42 = vpop.f32.mrf.mxu0 }
 0x21e   :  { %2159 = vst [vmem:[%s3130_s4 + $0x1c8] sm:$0xff] %v2459_v38  ;;  %2162 = vst [vmem:[%s3130_s4 + $0x1e0] sm:$0xff] %v2462_v40 }
 0x21f   :  { %v1147_v43 = vpop.f32.mrf.mxu1  ;;  %v1306_v44 = vpop.f32.mrf.mxu0 }
 0x220   :  { %v2481_v45 = vpack.c.bf16 %v1147_v43, %v1145_v41  ;;  %v2484_v46 = vpack.c.bf16 %v1306_v44, %v1304_v42 }
 0x221   :  { %v1237_v47 = vpop.f32.mrf.mxu1  ;;  %v1396_v48 = vpop.f32.mrf.mxu0 }
 0x222   :  { %2181 = vst [vmem:[%s3130_s4 + $0x278] sm:$0xff] %v2481_v45  ;;  %2184 = vst [vmem:[%s3130_s4 + $0x290] sm:$0xff] %v2484_v46 }
 0x223   :  { %v1239_v49 = vpop.f32.mrf.mxu1  ;;  %v1398_v50 = vpop.f32.mrf.mxu0 }
 0x224   :  { %v2417_v51 = vpack.c.bf16 %v1239_v49, %v1237_v47  ;;  %v2420_v52 = vpack.c.bf16 %v1398_v50, %v1396_v48 }
 0x225   :  { %v1241_v53 = vpop.f32.mrf.mxu1  ;;  %v1400_v54 = vpop.f32.mrf.mxu0 }
 0x226   :  { %2117 = vst [vmem:[%s3130_s4 + $0x78] sm:$0xff] %v2417_v51  ;;  %2120 = vst [vmem:[%s3130_s4 + $0x90] sm:$0xff] %v2420_v52 }
 0x227   :  { %v1243_v17 = vpop.f32.mrf.mxu1  ;;  %v1402_v32 = vpop.f32.mrf.mxu0 }
 0x228   :  { %v2439_v55 = vpack.c.bf16 %v1243_v17, %v1241_v53  ;;  %v2442_v39 = vpack.c.bf16 %v1402_v32, %v1400_v54 }
 0x229   :  { %v1247_v56 = vpop.f32.mrf.mxu1  ;;  %v1406_v57 = vpop.f32.mrf.mxu0 }
 0x22a   :  { %2139 = vst [vmem:[%s3130_s4 + $0x128] sm:$0xff] %v2439_v55  ;;  %2142 = vst [vmem:[%s3130_s4 + $0x140] sm:$0xff] %v2442_v39 }
 0x22b   :  { %v1249_v58 = vpop.f32.mrf.mxu1  ;;  %v1408_v59 = vpop.f32.mrf.mxu0 }
 0x22c   :  { %v2461_v60 = vpack.c.bf16 %v1249_v58, %v1247_v56  ;;  %v2464_v61 = vpack.c.bf16 %v1408_v59, %v1406_v57 }
 0x22d   :  { %v1251_v62 = vpop.f32.mrf.mxu1  ;;  %v1410_v63 = vpop.f32.mrf.mxu0 }
 0x22e   :  { %2161 = vst [vmem:[%s3130_s4 + $0x1d8] sm:$0xff] %v2461_v60  ;;  %2164 = vst [vmem:[%s3130_s4 + $0x1f0] sm:$0xff] %v2464_v61 }
 0x22f   :  { %v1253_v0 = vpop.f32.mrf.mxu1  ;;  %v1412_v1 = vpop.f32.mrf.mxu0 }
 0x230   :  { %v2483_v2 = vpack.c.bf16 %v1253_v0, %v1251_v62  ;;  %v2486_v3 = vpack.c.bf16 %v1412_v1, %v1410_v63 }
 0x231   :  { %v1343_v4 = vpop.f32.mrf.mxu1  ;;  %v1502_v5 = vpop.f32.mrf.mxu0 }
 0x232   :  { %2183 = vst [vmem:[%s3130_s4 + $0x288] sm:$0xff] %v2483_v2  ;;  %2186 = vst [vmem:[%s3130_s4 + $0x2a0] sm:$0xff] %v2486_v3 }
 0x233   :  { %v1345_v6 = vpop.f32.mrf.mxu1  ;;  %v1504_v7 = vpop.f32.mrf.mxu0 }
 0x234   :  { %v2419_v8 = vpack.c.bf16 %v1345_v6, %v1343_v4  ;;  %v2422_v9 = vpack.c.bf16 %v1504_v7, %v1502_v5 }
 0x235   :  { %v1347_v10 = vpop.f32.mrf.mxu1  ;;  %v1506_v11 = vpop.f32.mrf.mxu0 }
 0x236   :  { %2119 = vst [vmem:[%s3130_s4 + $0x88] sm:$0xff] %v2419_v8  ;;  %2122 = vst [vmem:[%s3130_s4 + $0xa0] sm:$0xff] %v2422_v9 }
 0x237   :  { %v1349_v12 = vpop.f32.mrf.mxu1  ;;  %v1508_v13 = vpop.f32.mrf.mxu0 }
 0x238   :  { %v2441_v14 = vpack.c.bf16 %v1349_v12, %v1347_v10  ;;  %v2444_v15 = vpack.c.bf16 %v1508_v13, %v1506_v11 }
 0x239   :  { %v1353_v16 = vpop.f32.mrf.mxu1  ;;  %v1512_v18 = vpop.f32.mrf.mxu0 }
 0x23a   :  { %2141 = vst [vmem:[%s3130_s4 + $0x138] sm:$0xff] %v2441_v14  ;;  %2144 = vst [vmem:[%s3130_s4 + $0x150] sm:$0xff] %v2444_v15 }
 0x23b   :  { %v1355_v19 = vpop.f32.mrf.mxu1  ;;  %v1514_v20 = vpop.f32.mrf.mxu0 }
 0x23c   :  { %v2463_v21 = vpack.c.bf16 %v1355_v19, %v1353_v16  ;;  %v2466_v22 = vpack.c.bf16 %v1514_v20, %v1512_v18 }
 0x23d   :  { %v1357_v23 = vpop.f32.mrf.mxu1  ;;  %v1516_v24 = vpop.f32.mrf.mxu0 }
 0x23e   :  { %2163 = vst [vmem:[%s3130_s4 + $0x1e8] sm:$0xff] %v2463_v21  ;;  %2166 = vst [vmem:[%s3130_s4 + $0x200] sm:$0xff] %v2466_v22 }
 0x23f   :  { %v1359_v25 = vpop.f32.mrf.mxu1  ;;  %v1518_v26 = vpop.f32.mrf.mxu0 }
 0x240   :  { %v2485_v27 = vpack.c.bf16 %v1359_v25, %v1357_v23  ;;  %v2488_v28 = vpack.c.bf16 %v1518_v26, %v1516_v24 }
 0x241   :  { %v1449_v29 = vpop.f32.mrf.mxu1 }
 0x242   :  { %2185 = vst [vmem:[%s3130_s4 + $0x298] sm:$0xff] %v2485_v27  ;;  %2188 = vst [vmem:[%s3130_s4 + $0x2b0] sm:$0xff] %v2488_v28 }
 0x243   :  { %v1451_v30 = vpop.f32.mrf.mxu1 }
 0x244   :  { %v2421_v31 = vpack.c.bf16 %v1451_v30, %v1449_v29 }
 0x245   :  { %v1453_v33 = vpop.f32.mrf.mxu1 }
 0x246   :  { %2121 = vst [vmem:[%s3130_s4 + $0x98] sm:$0xff] %v2421_v31 }
 0x247   :  { %v1455_v34 = vpop.f32.mrf.mxu1 }
 0x248   :  { %v2443_v35 = vpack.c.bf16 %v1455_v34, %v1453_v33 }
 0x249   :  { %v1459_v36 = vpop.f32.mrf.mxu1 }
 0x24a   :  { %2143 = vst [vmem:[%s3130_s4 + $0x148] sm:$0xff] %v2443_v35 }
 0x24b   :  { %v1461_v37 = vpop.f32.mrf.mxu1 }
 0x24c   :  { %v2465_v38 = vpack.c.bf16 %v1461_v37, %v1459_v36 }
 0x24d   :  { %v1463_v40 = vpop.f32.mrf.mxu1 }
 0x24e   :  { %2165 = vst [vmem:[%s3130_s4 + $0x1f8] sm:$0xff] %v2465_v38 }
 0x24f   :  { %v1465_v41 = vpop.f32.mrf.mxu1 }
 0x250   :  { %v2487_v42 = vpack.c.bf16 %v1465_v41, %v1463_v40 }
 0x251   :  { %v1555_v43 = vpop.f32.mrf.mxu1 }
 0x252   :  { %2187 = vst [vmem:[%s3130_s4 + $0x2a8] sm:$0xff] %v2487_v42 }
 0x253   :  { %v1557_v44 = vpop.f32.mrf.mxu1 }
 0x254   :  { %v2423_v45 = vpack.c.bf16 %v1557_v44, %v1555_v43 }
 0x255   :  { %v1559_v46 = vpop.f32.mrf.mxu1 }
 0x256   :  { %2123 = vst [vmem:[%s3130_s4 + $0xa8] sm:$0xff] %v2423_v45 }
 0x257   :  { %v1561_v47 = vpop.f32.mrf.mxu1 }
 0x258   :  { %v2445_v48 = vpack.c.bf16 %v1561_v47, %v1559_v46 }
 0x259   :  { %v1565_v49 = vpop.f32.mrf.mxu1 }
 0x25a   :  { %2145 = vst [vmem:[%s3130_s4 + $0x158] sm:$0xff] %v2445_v48 }
 0x25b   :  { %v1567_v50 = vpop.f32.mrf.mxu1 }
 0x25c   :  { %v2467_v51 = vpack.c.bf16 %v1567_v50, %v1565_v49 }
 0x25d   :  { %v1569_v52 = vpop.f32.mrf.mxu1 }
 0x25e   :  { %2167 = vst [vmem:[%s3130_s4 + $0x208] sm:$0xff] %v2467_v51 }
 0x25f   :  { %v1571_v53 = vpop.f32.mrf.mxu1 }
 0x260   :  { %v2489_v54 = vpack.c.bf16 %v1571_v53, %v1569_v52 }
 0x262   :  { %2189 = vst [vmem:[%s3130_s4 + $0x2b8] sm:$0xff] %v2489_v54 }

// kernel: adapter_forward.3
= control target key start
LH: loop header
LB: loop body
LE: loop exit
PB: predicated region body
PF: predicated region fallthrough
CT: control target
= control target key end

     0   :  { %s1972_s12 = smov 0   ;;  %s1974_s13 = smov 0   ;;  %s2810_s0 = inlined_call_operand.vmem [shape: bf16[80,180], index: 0, kind: input, shape index: {}]   ;;  %s2811_s1 = inlined_call_operand.vmem [shape: bf16[180,2048], index: 1, kind: input, shape index: {}]   ;;  %s2812_s2 = inlined_call_operand.vmem [shape: f32[80,1], index: 2, kind: input, shape index: {}]   ;;  %s2813_s3 = inlined_call_operand.vmem [shape: f32[80,2048], index: 3, kind: output, shape index: {}]  }
   0x1   :  { %s1976_s14 = smov 0  }
   0x2 LB: > { %s1731_s15 = sadd.s32 4294967295, %s1949_s14   ;;  %s1989_s16 = sadd.s32 1, %s1949_s14   ;;  %s1949_s14 = sphi %s1976_s14, %s2817_s14   ;;  %s1945_s13 = sphi %s1974_s13, %s2816_s13   ;;  %s1941_s12 = sphi %s1972_s12, %s2815_s12  }
   0x3   : > { %s38_s17 = ssub.s32 %s1949_s14, %s1989_s16  ;;  %s41_s18 = sadd.s32 1, %s1945_s13 }
   0x4   : > { %p39_p0 = scmp.eq.s32.totalorder %s38_s17, 0  ;;  %p48_p1 = scmp.ne.s32.totalorder %s1945_s13, %s1941_s12 }
   0x5   : > { %p49_p2 = scmp.eq.s32.totalorder %s1949_s14, 0  ;;  %p99_p3 = scmp.eq.s32.totalorder %s1731_s15, 1 }
   0x6   : > { %s2000_s19 = scalar_select %p39_p0, %s1945_s13, %s41_s18  }
   0x7   : > { %p50_p4 = por %p49_p2, %p48_p1  ;;  %p2002_p5 = por %p99_p3, %p48_p1 }
   0x8   : > { %p1734_p6 = scmp.ge.s32.totalorder %s1949_s14, 2 }
   0xa   : > { %127 = sbr.rel (%p1734_p6) target bundleno = 66 (0x42), region = 24 }
   0xf   : > { %130 = sbr.rel (!%p50_p4) target bundleno = 66 (0x42), region = 28  ;;  %s132_s21 = sand.u32 (%p50_p4), 1, %s1945_s13  }
  0x10   : > { %s1872_s22 = sshll.u32 (%p50_p4), %s1949_s14, 5  ;;  %s1874_s23 = smul.u32 (%p50_p4), 736, %s132_s21 }
  0x11   : > { %s2012_s26 = scalar_lea.vmem (%p50_p4), %s2811_s1, %s1872_s22 }
  0x12   : > { %v150_v0 = vld [vmem:[%s2012_s26] sm:$0xff] (%p50_p4)  ;;  %v152_v1 = vld [vmem:[%s2012_s26 + $0x8] sm:$0xff] (%p50_p4)  ;;  %v154_v2 = vld [vmem:[%s2012_s26 + $0x10] sm:$0xff] (%p50_p4)  ;;  %s2020_s27 = scalar_lea.vmem (%p50_p4), [#allocation2], %s1874_s23 }
  0x13   : > { %v156_v3 = vld [vmem:[%s2012_s26 + $0x18] sm:$0xff] (%p50_p4)  ;;  %v158_v4 = vld [vmem:[%s2012_s26 + $0x40] sm:$0xff] (%p50_p4)  ;;  %v160_v5 = vld [vmem:[%s2012_s26 + $0x48] sm:$0xff] (%p50_p4)  ;;  %151 = vst [vmem:[%s2020_s27] sm:$0xff] (%p50_p4), %v150_v0 }
  0x14   : > { %153 = vst [vmem:[%s2020_s27 + $0x8] sm:$0xff] %v152_v1  ;;  %155 = vst [vmem:[%s2020_s27 + $0x10] sm:$0xff] %v154_v2  ;;  %v162_v6 = vld [vmem:[%s2012_s26 + $0x50] sm:$0xff]  ;;  %v164_v7 = vld [vmem:[%s2012_s26 + $0x58] sm:$0xff] }
  0x15   : > { %157 = vst [vmem:[%s2020_s27 + $0x18] sm:$0xff] %v156_v3  ;;  %159 = vst [vmem:[%s2020_s27 + $0x20] sm:$0xff] %v158_v4  ;;  %v166_v8 = vld [vmem:[%s2012_s26 + $0x80] sm:$0xff]  ;;  %v168_v9 = vld [vmem:[%s2012_s26 + $0x88] sm:$0xff] }
  0x16   : > { %161 = vst [vmem:[%s2020_s27 + $0x28] sm:$0xff] %v160_v5  ;;  %163 = vst [vmem:[%s2020_s27 + $0x30] sm:$0xff] %v162_v6  ;;  %v170_v10 = vld [vmem:[%s2012_s26 + $0x90] sm:$0xff]  ;;  %v172_v11 = vld [vmem:[%s2012_s26 + $0x98] sm:$0xff] }
  0x17   : > { %165 = vst [vmem:[%s2020_s27 + $0x38] sm:$0xff] %v164_v7  ;;  %167 = vst [vmem:[%s2020_s27 + $0x40] sm:$0xff] %v166_v8  ;;  %v174_v12 = vld [vmem:[%s2012_s26 + $0xc0] sm:$0xff]  ;;  %v176_v13 = vld [vmem:[%s2012_s26 + $0xc8] sm:$0xff] }
  0x18   : > { %169 = vst [vmem:[%s2020_s27 + $0x48] sm:$0xff] %v168_v9  ;;  %171 = vst [vmem:[%s2020_s27 + $0x50] sm:$0xff] %v170_v10  ;;  %v178_v14 = vld [vmem:[%s2012_s26 + $0xd0] sm:$0xff]  ;;  %v180_v15 = vld [vmem:[%s2012_s26 + $0xd8] sm:$0xff] }
  0x19   : > { %173 = vst [vmem:[%s2020_s27 + $0x58] sm:$0xff] %v172_v11  ;;  %175 = vst [vmem:[%s2020_s27 + $0x60] sm:$0xff] %v174_v12  ;;  %v182_v16 = vld [vmem:[%s2012_s26 + $0x100] sm:$0xff]  ;;  %v184_v17 = vld [vmem:[%s2012_s26 + $0x108] sm:$0xff] }
  0x1a   : > { %177 = vst [vmem:[%s2020_s27 + $0x68] sm:$0xff] %v176_v13  ;;  %179 = vst [vmem:[%s2020_s27 + $0x70] sm:$0xff] %v178_v14  ;;  %v186_v18 = vld [vmem:[%s2012_s26 + $0x110] sm:$0xff]  ;;  %v188_v19 = vld [vmem:[%s2012_s26 + $0x118] sm:$0xff] }
  0x1b   : > { %181 = vst [vmem:[%s2020_s27 + $0x78] sm:$0xff] %v180_v15  ;;  %183 = vst [vmem:[%s2020_s27 + $0x80] sm:$0xff] %v182_v16  ;;  %v190_v20 = vld [vmem:[%s2012_s26 + $0x140] sm:$0xff]  ;;  %v192_v21 = vld [vmem:[%s2012_s26 + $0x148] sm:$0xff] }
  0x1c   : > { %185 = vst [vmem:[%s2020_s27 + $0x88] sm:$0xff] %v184_v17  ;;  %187 = vst [vmem:[%s2020_s27 + $0x90] sm:$0xff] %v186_v18  ;;  %v194_v22 = vld [vmem:[%s2012_s26 + $0x150] sm:$0xff]  ;;  %v196_v23 = vld [vmem:[%s2012_s26 + $0x158] sm:$0xff] }
  0x1d   : > { %189 = vst [vmem:[%s2020_s27 + $0x98] sm:$0xff] %v188_v19  ;;  %191 = vst [vmem:[%s2020_s27 + $0xa0] sm:$0xff] %v190_v20  ;;  %v198_v24 = vld [vmem:[%s2012_s26 + $0x180] sm:$0xff]  ;;  %v200_v25 = vld [vmem:[%s2012_s26 + $0x188] sm:$0xff] }
  0x1e   : > { %193 = vst [vmem:[%s2020_s27 + $0xa8] sm:$0xff] %v192_v21  ;;  %195 = vst [vmem:[%s2020_s27 + $0xb0] sm:$0xff] %v194_v22  ;;  %v202_v26 = vld [vmem:[%s2012_s26 + $0x190] sm:$0xff]  ;;  %v204_v27 = vld [vmem:[%s2012_s26 + $0x198] sm:$0xff] }
  0x1f   : > { %197 = vst [vmem:[%s2020_s27 + $0xb8] sm:$0xff] %v196_v23  ;;  %199 = vst [vmem:[%s2020_s27 + $0xc0] sm:$0xff] %v198_v24  ;;  %v206_v28 = vld [vmem:[%s2012_s26 + $0x1c0] sm:$0xff]  ;;  %v208_v29 = vld [vmem:[%s2012_s26 + $0x1c8] sm:$0xff] }
  0x20   : > { %201 = vst [vmem:[%s2020_s27 + $0xc8] sm:$0xff] %v200_v25  ;;  %203 = vst [vmem:[%s2020_s27 + $0xd0] sm:$0xff] %v202_v26  ;;  %v210_v30 = vld [vmem:[%s2012_s26 + $0x1d0] sm:$0xff]  ;;  %v212_v31 = vld [vmem:[%s2012_s26 + $0x1d8] sm:$0xff] }
  0x21   : > { %205 = vst [vmem:[%s2020_s27 + $0xd8] sm:$0xff] %v204_v27  ;;  %207 = vst [vmem:[%s2020_s27 + $0xe0] sm:$0xff] %v206_v28  ;;  %v214_v32 = vld [vmem:[%s2012_s26 + $0x200] sm:$0xff]  ;;  %v216_v33 = vld [vmem:[%s2012_s26 + $0x208] sm:$0xff] }
  0x22   : > { %209 = vst [vmem:[%s2020_s27 + $0xe8] sm:$0xff] %v208_v29  ;;  %211 = vst [vmem:[%s2020_s27 + $0xf0] sm:$0xff] %v210_v30  ;;  %v218_v34 = vld [vmem:[%s2012_s26 + $0x210] sm:$0xff]  ;;  %v220_v35 = vld [vmem:[%s2012_s26 + $0x218] sm:$0xff] }
  0x23   : > { %213 = vst [vmem:[%s2020_s27 + $0xf8] sm:$0xff] %v212_v31  ;;  %215 = vst [vmem:[%s2020_s27 + $0x100] sm:$0xff] %v214_v32  ;;  %v222_v36 = vld [vmem:[%s2012_s26 + $0x240] sm:$0xff]  ;;  %v224_v37 = vld [vmem:[%s2012_s26 + $0x248] sm:$0xff] }
  0x24   : > { %217 = vst [vmem:[%s2020_s27 + $0x108] sm:$0xff] %v216_v33  ;;  %219 = vst [vmem:[%s2020_s27 + $0x110] sm:$0xff] %v218_v34  ;;  %v226_v38 = vld [vmem:[%s2012_s26 + $0x250] sm:$0xff]  ;;  %v228_v39 = vld [vmem:[%s2012_s26 + $0x258] sm:$0xff] }
  0x25   : > { %221 = vst [vmem:[%s2020_s27 + $0x118] sm:$0xff] %v220_v35  ;;  %223 = vst [vmem:[%s2020_s27 + $0x120] sm:$0xff] %v222_v36  ;;  %v230_v40 = vld [vmem:[%s2012_s26 + $0x280] sm:$0xff]  ;;  %v232_v41 = vld [vmem:[%s2012_s26 + $0x288] sm:$0xff] }
  0x26   : > { %225 = vst [vmem:[%s2020_s27 + $0x128] sm:$0xff] %v224_v37  ;;  %227 = vst [vmem:[%s2020_s27 + $0x130] sm:$0xff] %v226_v38  ;;  %v234_v42 = vld [vmem:[%s2012_s26 + $0x290] sm:$0xff]  ;;  %v236_v43 = vld [vmem:[%s2012_s26 + $0x298] sm:$0xff] }
  0x27   : > { %229 = vst [vmem:[%s2020_s27 + $0x138] sm:$0xff] %v228_v39  ;;  %231 = vst [vmem:[%s2020_s27 + $0x140] sm:$0xff] %v230_v40  ;;  %v238_v44 = vld [vmem:[%s2012_s26 + $0x2c0] sm:$0xff]  ;;  %v240_v45 = vld [vmem:[%s2012_s26 + $0x2c8] sm:$0xff] }
  0x28   : > { %233 = vst [vmem:[%s2020_s27 + $0x148] sm:$0xff] %v232_v41  ;;  %235 = vst [vmem:[%s2020_s27 + $0x150] sm:$0xff] %v234_v42  ;;  %v242_v46 = vld [vmem:[%s2012_s26 + $0x2d0] sm:$0xff]  ;;  %v244_v47 = vld [vmem:[%s2012_s26 + $0x2d8] sm:$0xff] }
  0x29   : > { %237 = vst [vmem:[%s2020_s27 + $0x158] sm:$0xff] %v236_v43  ;;  %239 = vst [vmem:[%s2020_s27 + $0x160] sm:$0xff] %v238_v44  ;;  %v246_v48 = vld [vmem:[%s2012_s26 + $0x300] sm:$0xff]  ;;  %v248_v49 = vld [vmem:[%s2012_s26 + $0x308] sm:$0xff] }
  0x2a   : > { %241 = vst [vmem:[%s2020_s27 + $0x168] sm:$0xff] %v240_v45  ;;  %243 = vst [vmem:[%s2020_s27 + $0x170] sm:$0xff] %v242_v46  ;;  %v250_v50 = vld [vmem:[%s2012_s26 + $0x310] sm:$0xff]  ;;  %v252_v51 = vld [vmem:[%s2012_s26 + $0x318] sm:$0xff] }
  0x2b   : > { %245 = vst [vmem:[%s2020_s27 + $0x178] sm:$0xff] %v244_v47  ;;  %247 = vst [vmem:[%s2020_s27 + $0x180] sm:$0xff] %v246_v48  ;;  %v254_v52 = vld [vmem:[%s2012_s26 + $0x340] sm:$0xff]  ;;  %v256_v53 = vld [vmem:[%s2012_s26 + $0x348] sm:$0xff] }
  0x2c   : > { %249 = vst [vmem:[%s2020_s27 + $0x188] sm:$0xff] %v248_v49  ;;  %251 = vst [vmem:[%s2020_s27 + $0x190] sm:$0xff] %v250_v50  ;;  %v258_v54 = vld [vmem:[%s2012_s26 + $0x350] sm:$0xff]  ;;  %v260_v55 = vld [vmem:[%s2012_s26 + $0x358] sm:$0xff] }
  0x2d   : > { %253 = vst [vmem:[%s2020_s27 + $0x198] sm:$0xff] %v252_v51  ;;  %255 = vst [vmem:[%s2020_s27 + $0x1a0] sm:$0xff] %v254_v52  ;;  %v262_v56 = vld [vmem:[%s2012_s26 + $0x380] sm:$0xff]  ;;  %v264_v57 = vld [vmem:[%s2012_s26 + $0x388] sm:$0xff] }
  0x2e   : > { %257 = vst [vmem:[%s2020_s27 + $0x1a8] sm:$0xff] %v256_v53  ;;  %259 = vst [vmem:[%s2020_s27 + $0x1b0] sm:$0xff] %v258_v54  ;;  %v266_v58 = vld [vmem:[%s2012_s26 + $0x390] sm:$0xff]  ;;  %v268_v59 = vld [vmem:[%s2012_s26 + $0x398] sm:$0xff] }
  0x2f   : > { %261 = vst [vmem:[%s2020_s27 + $0x1b8] sm:$0xff] %v260_v55  ;;  %263 = vst [vmem:[%s2020_s27 + $0x1c0] sm:$0xff] %v262_v56  ;;  %v270_v60 = vld [vmem:[%s2012_s26 + $0x3c0] sm:$0xff]  ;;  %v272_v61 = vld [vmem:[%s2012_s26 + $0x3c8] sm:$0xff] }
  0x30   : > { %265 = vst [vmem:[%s2020_s27 + $0x1c8] sm:$0xff] %v264_v57  ;;  %267 = vst [vmem:[%s2020_s27 + $0x1d0] sm:$0xff] %v266_v58  ;;  %v274_v62 = vld [vmem:[%s2012_s26 + $0x3d0] sm:$0xff]  ;;  %v276_v63 = vld [vmem:[%s2012_s26 + $0x3d8] sm:$0xff] }
  0x31   : > { %269 = vst [vmem:[%s2020_s27 + $0x1d8] sm:$0xff] %v268_v59  ;;  %271 = vst [vmem:[%s2020_s27 + $0x1e0] sm:$0xff] %v270_v60  ;;  %v278_v0 = vld [vmem:[%s2012_s26 + $0x400] sm:$0xff]  ;;  %v280_v1 = vld [vmem:[%s2012_s26 + $0x408] sm:$0xff] }
  0x32   : > { %273 = vst [vmem:[%s2020_s27 + $0x1e8] sm:$0xff] %v272_v61  ;;  %275 = vst [vmem:[%s2020_s27 + $0x1f0] sm:$0xff] %v274_v62  ;;  %v282_v2 = vld [vmem:[%s2012_s26 + $0x410] sm:$0xff]  ;;  %v284_v3 = vld [vmem:[%s2012_s26 + $0x418] sm:$0xff] }
  0x33   : > { %277 = vst [vmem:[%s2020_s27 + $0x1f8] sm:$0xff] %v276_v63  ;;  %279 = vst [vmem:[%s2020_s27 + $0x200] sm:$0xff] %v278_v0  ;;  %v286_v4 = vld [vmem:[%s2012_s26 + $0x440] sm:$0xff]  ;;  %v288_v5 = vld [vmem:[%s2012_s26 + $0x448] sm:$0xff] }
  0x34   : > { %281 = vst [vmem:[%s2020_s27 + $0x208] sm:$0xff] %v280_v1  ;;  %283 = vst [vmem:[%s2020_s27 + $0x210] sm:$0xff] %v282_v2  ;;  %v290_v6 = vld [vmem:[%s2012_s26 + $0x450] sm:$0xff]  ;;  %v292_v7 = vld [vmem:[%s2012_s26 + $0x458] sm:$0xff] }
  0x35   : > { %285 = vst [vmem:[%s2020_s27 + $0x218] sm:$0xff] %v284_v3  ;;  %287 = vst [vmem:[%s2020_s27 + $0x220] sm:$0xff] %v286_v4  ;;  %v294_v8 = vld [vmem:[%s2012_s26 + $0x480] sm:$0xff]  ;;  %v296_v9 = vld [vmem:[%s2012_s26 + $0x488] sm:$0xff] }
  0x36   : > { %289 = vst [vmem:[%s2020_s27 + $0x228] sm:$0xff] %v288_v5  ;;  %291 = vst [vmem:[%s2020_s27 + $0x230] sm:$0xff] %v290_v6  ;;  %v298_v10 = vld [vmem:[%s2012_s26 + $0x490] sm:$0xff]  ;;  %v300_v11 = vld [vmem:[%s2012_s26 + $0x498] sm:$0xff] }
  0x37   : > { %293 = vst [vmem:[%s2020_s27 + $0x238] sm:$0xff] %v292_v7  ;;  %295 = vst [vmem:[%s2020_s27 + $0x240] sm:$0xff] %v294_v8  ;;  %v302_v12 = vld [vmem:[%s2012_s26 + $0x4c0] sm:$0xff]  ;;  %v304_v13 = vld [vmem:[%s2012_s26 + $0x4c8] sm:$0xff] }
  0x38   : > { %297 = vst [vmem:[%s2020_s27 + $0x248] sm:$0xff] %v296_v9  ;;  %299 = vst [vmem:[%s2020_s27 + $0x250] sm:$0xff] %v298_v10  ;;  %v306_v14 = vld [vmem:[%s2012_s26 + $0x4d0] sm:$0xff]  ;;  %v308_v15 = vld [vmem:[%s2012_s26 + $0x4d8] sm:$0xff] }
  0x39   : > { %301 = vst [vmem:[%s2020_s27 + $0x258] sm:$0xff] %v300_v11  ;;  %303 = vst [vmem:[%s2020_s27 + $0x260] sm:$0xff] %v302_v12  ;;  %v310_v16 = vld [vmem:[%s2012_s26 + $0x500] sm:$0xff]  ;;  %v312_v17 = vld [vmem:[%s2012_s26 + $0x508] sm:$0xff] }
  0x3a   : > { %305 = vst [vmem:[%s2020_s27 + $0x268] sm:$0xff] %v304_v13  ;;  %307 = vst [vmem:[%s2020_s27 + $0x270] sm:$0xff] %v306_v14  ;;  %v314_v18 = vld [vmem:[%s2012_s26 + $0x510] sm:$0xff]  ;;  %v316_v19 = vld [vmem:[%s2012_s26 + $0x518] sm:$0xff] }
  0x3b   : > { %309 = vst [vmem:[%s2020_s27 + $0x278] sm:$0xff] %v308_v15  ;;  %311 = vst [vmem:[%s2020_s27 + $0x280] sm:$0xff] %v310_v16  ;;  %v318_v20 = vld [vmem:[%s2012_s26 + $0x540] sm:$0xff]  ;;  %v320_v21 = vld [vmem:[%s2012_s26 + $0x548] sm:$0xff] }
  0x3c   : > { %313 = vst [vmem:[%s2020_s27 + $0x288] sm:$0xff] %v312_v17  ;;  %315 = vst [vmem:[%s2020_s27 + $0x290] sm:$0xff] %v314_v18  ;;  %v322_v22 = vld [vmem:[%s2012_s26 + $0x550] sm:$0xff]  ;;  %v324_v23 = vld [vmem:[%s2012_s26 + $0x558] sm:$0xff] }
  0x3d   : > { %317 = vst [vmem:[%s2020_s27 + $0x298] sm:$0xff] %v316_v19  ;;  %319 = vst [vmem:[%s2020_s27 + $0x2a0] sm:$0xff] %v318_v20  ;;  %v326_v24 = vld [vmem:[%s2012_s26 + $0x580] sm:$0xff]  ;;  %v328_v25 = vld [vmem:[%s2012_s26 + $0x588] sm:$0xff] }
  0x3e   : > { %321 = vst [vmem:[%s2020_s27 + $0x2a8] sm:$0xff] %v320_v21  ;;  %323 = vst [vmem:[%s2020_s27 + $0x2b0] sm:$0xff] %v322_v22  ;;  %v330_v26 = vld [vmem:[%s2012_s26 + $0x590] sm:$0xff]  ;;  %v332_v27 = vld [vmem:[%s2012_s26 + $0x598] sm:$0xff] }
  0x3f   : > { %325 = vst [vmem:[%s2020_s27 + $0x2b8] sm:$0xff] %v324_v23  ;;  %327 = vst [vmem:[%s2020_s27 + $0x2c0] sm:$0xff] %v326_v24 }
  0x40   : > { %329 = vst [vmem:[%s2020_s27 + $0x2c8] sm:$0xff] %v328_v25  ;;  %331 = vst [vmem:[%s2020_s27 + $0x2d0] sm:$0xff] %v330_v26 }
  0x41   : > { %333 = vst [vmem:[%s2020_s27 + $0x2d8] sm:$0xff] %v332_v27 }
  0x42 PF: > { %p1737_p7 = scmp.ge.s32.totalorder %s1949_s14, 1  ;;  %p338_p8 = scmp.lt.s32.totalorder %s1949_s14, 3 }
  0x44   : > { %p339_p9 = pnand %p1737_p7, %p338_p8 }
  0x45   : > { %s345_s28 = sand.u32 (!%p339_p9), 1, %s1941_s12  }
  0x46   : > { %342 = sbr.rel (%p339_p9) target bundleno = 435 (0x1b3), region = 51 }
  0x47   : > { %s1875_s4 = smul.u32 (!%p339_p9), 736, %s345_s28 }
  0x49   : > { %s2214_s5 = scalar_lea.vmem (!%p339_p9), [#allocation2], %s1875_s4 }
  0x4b   : > { %v2206_v28 = vld [vmem:[%s2810_s0 + $0x4] ss:$8 sps:$4 sm:$0xff]   ;;  %vm1037_vm0 = vcmask 424960   ;;  %v1951_v29 = vmov 0   ;;  %vm1053_vm1 = vcmask 1041408   ;;  %s1873_s12 = sshll.u32 (%p2002_p5), %s1731_s15, 6 }
  0x4c   : > { %1845 = vmatprep.mubr.msk.bf16.mxu0 %vm1037_vm0, %v2206_v28  ;;  %1851 = vmatprep.mubr.msk.bf16.mxu1 %vm1037_vm0, %v2206_v28  ;;  %v436_v30 = vld [vmem:[%s2214_s5 + $0x1c0] sm:$0xff]  ;;  %v437_v32 = vld [vmem:[%s2214_s5 + $0x1c8] sm:$0xff]  ;;  %s2641_s20 = scalar_lea.vmem (%p2002_p5), %s2813_s3, %s1873_s12 }
  0x4d   : > { %1902 = vset.pattern.permute.xlu0 %v1951_v29  ;;  %1903 = vset.pattern.permute.xlu1 %v1951_v29  ;;  %v440_v31 = vld [vmem:[%s2214_s5 + $0x1e0] sm:$0xff]  ;;  %v441_v34 = vld [vmem:[%s2214_s5 + $0x1e8] sm:$0xff] }
  0x4e   : > { %v1805_v33 = vcombine.high %v436_v30, %v440_v31  ;;  %v1804_v35 = vcombine.low %v436_v30, %v440_v31  ;;  %v428_v36 = vld [vmem:[%s2214_s5 + $0x180] sm:$0xff]  ;;  %v1807_v38 = vcombine.high %v437_v32, %v441_v34  ;;  %v1806_v39 = vcombine.low %v437_v32, %v441_v34  ;;  %v429_v41 = vld [vmem:[%s2214_s5 + $0x188] sm:$0xff] }
  0x4f   : > { %v432_v37 = vld [vmem:[%s2214_s5 + $0x1a0] sm:$0xff]  ;;  %v433_v42 = vld [vmem:[%s2214_s5 + $0x1a8] sm:$0xff] }
  0x50   : > { %v1797_v40 = vcombine.high %v428_v36, %v432_v37  ;;  %v420_v43 = vld [vmem:[%s2214_s5 + $0x140] sm:$0xff]  ;;  %1078 = vmatprep.subr.bf16.mxu0 %v1805_v33  ;;  %v1799_v44 = vcombine.high %v429_v41, %v433_v42  ;;  %v421_v46 = vld [vmem:[%s2214_s5 + $0x148] sm:$0xff]  ;;  %1161 = vmatprep.subr.bf16.mxu1 %v1807_v38  ;;  %v1796_v48 = vcombine.low %v428_v36, %v432_v37 }
  0x51   : > { %v424_v45 = vld [vmem:[%s2214_s5 + $0x160] sm:$0xff]  ;;  %v425_v47 = vld [vmem:[%s2214_s5 + $0x168] sm:$0xff]  ;;  %1079 = vmatpush1.bf16.msra.mxu0 %v1804_v35  ;;  %1162 = vmatpush1.bf16.msra.mxu1 %v1806_v39  ;;  %v1798_v49 = vcombine.low %v429_v41, %v433_v42 }
  0x52   : > { %1080 = vmatprep.subr.bf16.mxu0 %v1797_v40  ;;  %v1789_v50 = vcombine.high %v420_v43, %v424_v45  ;;  %1163 = vmatprep.subr.bf16.mxu1 %v1799_v44  ;;  %v1791_v51 = vcombine.high %v421_v46, %v425_v47  ;;  %v412_v52 = vld [vmem:[%s2214_s5 + $0x100] sm:$0xff]  ;;  %v413_v54 = vld [vmem:[%s2214_s5 + $0x108] sm:$0xff]  ;;  %v1788_v56 = vcombine.low %v420_v43, %v424_v45 }
  0x53   : > { %v416_v53 = vld [vmem:[%s2214_s5 + $0x120] sm:$0xff]  ;;  %v417_v55 = vld [vmem:[%s2214_s5 + $0x128] sm:$0xff]  ;;  %v1790_v57 = vcombine.low %v421_v46, %v425_v47 }
  0x54   : > { %v1781_v58 = vcombine.high %v412_v52, %v416_v53  ;;  %v1783_v59 = vcombine.high %v413_v54, %v417_v55  ;;  %v404_v60 = vld [vmem:[%s2214_s5 + $0xc0] sm:$0xff]  ;;  %v405_v62 = vld [vmem:[%s2214_s5 + $0xc8] sm:$0xff]  ;;  %v1780_v0 = vcombine.low %v412_v52, %v416_v53  ;;  %v1782_v1 = vcombine.low %v413_v54, %v417_v55  ;;  %v475_v53 = vld [vmem:[%s2812_s2 + $0x18] sm:$0xff] }
  0x55   : > { %1081 = vmatpush1.bf16.msra.mxu0 %v1796_v48  ;;  %1164 = vmatpush1.bf16.msra.mxu1 %v1798_v49  ;;  %v408_v61 = vld [vmem:[%s2214_s5 + $0xe0] sm:$0xff]  ;;  %v409_v63 = vld [vmem:[%s2214_s5 + $0xe8] sm:$0xff]  ;;  %v474_v48 = vld [vmem:[%s2812_s2 + $0x10] sm:$0xff] }
  0x56   : > { %1082 = vmatprep.subr.bf16.mxu0 %v1789_v50  ;;  %1165 = vmatprep.subr.bf16.mxu1 %v1791_v51  ;;  %v1773_v2 = vcombine.high %v404_v60, %v408_v61  ;;  %v1775_v3 = vcombine.high %v405_v62, %v409_v63  ;;  %v396_v4 = vld [vmem:[%s2214_s5 + $0x80] sm:$0xff]  ;;  %v397_v6 = vld [vmem:[%s2214_s5 + $0x88] sm:$0xff]  ;;  %v1772_v8 = vcombine.low %v404_v60, %v408_v61 }
  0x57   : > { %v400_v5 = vld [vmem:[%s2214_s5 + $0xa0] sm:$0xff]  ;;  %v401_v7 = vld [vmem:[%s2214_s5 + $0xa8] sm:$0xff]  ;;  %v1774_v9 = vcombine.low %v405_v62, %v409_v63  ;;  %494 = vperm.xlu1 %1903, %v474_v48  }
  0x58   : > { %v1765_v10 = vcombine.high %v396_v4, %v400_v5  ;;  %v1767_v11 = vcombine.high %v397_v6, %v401_v7  ;;  %v388_v12 = vld [vmem:[%s2214_s5 + $0x40] sm:$0xff]  ;;  %v389_v14 = vld [vmem:[%s2214_s5 + $0x48] sm:$0xff]  ;;  %v1764_v16 = vcombine.low %v396_v4, %v400_v5  ;;  %v1766_v17 = vcombine.low %v397_v6, %v401_v7  ;;  %v442_v4 = vld [vmem:[%s2214_s5 + $0x1f0] sm:$0xff] }
  0x59   : > { %1083 = vmatpush1.bf16.msra.mxu0 %v1788_v56  ;;  %1166 = vmatpush1.bf16.msra.mxu1 %v1790_v57  ;;  %v392_v13 = vld [vmem:[%s2214_s5 + $0x60] sm:$0xff]  ;;  %v393_v15 = vld [vmem:[%s2214_s5 + $0x68] sm:$0xff]  ;;  %v439_v5 = vld [vmem:[%s2214_s5 + $0x1d8] sm:$0xff] }
  0x5a   : > { %1084 = vmatprep.subr.bf16.mxu0 %v1781_v58  ;;  %1167 = vmatprep.subr.bf16.mxu1 %v1783_v59  ;;  %v1757_v18 = vcombine.high %v388_v12, %v392_v13  ;;  %v1759_v19 = vcombine.high %v389_v14, %v393_v15  ;;  %v380_v20 = vld [vmem:[%s2214_s5] sm:$0xff]  ;;  %v381_v22 = vld [vmem:[%s2214_s5 + $0x8] sm:$0xff]  ;;  %v1756_v24 = vcombine.low %v388_v12, %v392_v13  ;;  %v443_v6 = vld [vmem:[%s2214_s5 + $0x1f8] sm:$0xff] }
  0x5b   : > { %v384_v21 = vld [vmem:[%s2214_s5 + $0x20] sm:$0xff]  ;;  %v385_v23 = vld [vmem:[%s2214_s5 + $0x28] sm:$0xff]  ;;  %v1758_v25 = vcombine.low %v389_v14, %v393_v15  ;;  %499 = vperm.xlu1 %1903, %v475_v53   ;;  %v478_v7 = vld [vmem:[%s2812_s2 + $0x30] sm:$0xff]  ;;  %v1811_v13 = vcombine.high %v439_v5, %v443_v6 }
  0x5c   : > { %v1749_v26 = vcombine.high %v380_v20, %v384_v21  ;;  %v1751_v27 = vcombine.high %v381_v22, %v385_v23  ;;  %v468_v29 = vld [vmem:[%s2214_s5 + $0x2c0] sm:$0x33]  ;;  %v469_v30 = vld [vmem:[%s2214_s5 + $0x2c8] sm:$0x33]  ;;  %v1748_v31 = vcombine.low %v380_v20, %v384_v21  ;;  %v1750_v32 = vcombine.low %v381_v22, %v385_v23  ;;  %v430_v14 = vld [vmem:[%s2214_s5 + $0x190] sm:$0xff] }
  0x5d   : > { %1085 = vmatpush1.bf16.msra.mxu0 %v1780_v0  ;;  %1168 = vmatpush1.bf16.msra.mxu1 %v1782_v1  ;;  %v1837_v33 = vcombine.high %v468_v29, %v468_v29  ;;  %v1836_v34 = vcombine.low %v468_v29, %v468_v29  ;;  %v1839_v35 = vcombine.high %v469_v30, %v469_v30  ;;  %v460_v37 = vld [vmem:[%s2214_s5 + $0x280] sm:$0xff]  ;;  %v461_v39 = vld [vmem:[%s2214_s5 + $0x288] sm:$0xff]  ;;  %v434_v15 = vld [vmem:[%s2214_s5 + $0x1b0] sm:$0xff] }
  0x5e   : > { %1086 = vmatprep.subr.bf16.mxu0 %v1773_v2  ;;  %1169 = vmatprep.subr.bf16.mxu1 %v1775_v3  ;;  %v1838_v36 = vcombine.low %v469_v30, %v469_v30  ;;  %v464_v38 = vld [vmem:[%s2214_s5 + $0x2a0] sm:$0xff]  ;;  %v465_v40 = vld [vmem:[%s2214_s5 + $0x2a8] sm:$0xff]  ;;  %v438_v3 = vld [vmem:[%s2214_s5 + $0x1d0] sm:$0xff]  ;;  %v1810_v21 = vcombine.low %v439_v5, %v443_v6  ;;  %v1801_v22 = vcombine.high %v430_v14, %v434_v15 }
  0x5f   : > { %v1055_v41 = vsel %vm1053_vm1, %v1836_v34, 0  ;;  %v1829_v42 = vcombine.high %v460_v37, %v464_v38  ;;  %v472_v43 = vld [vmem:[%s2812_s2] sm:$0xff]  ;;  %v1831_v45 = vcombine.high %v461_v39, %v465_v40  ;;  %v453_v49 = vld [vmem:[%s2214_s5 + $0x248] sm:$0xff]  ;;  %v1828_v52 = vcombine.low %v460_v37, %v464_v38  ;;  %v427_v29 = vld [vmem:[%s2214_s5 + $0x178] sm:$0xff] }
  0x60   : > { %v1061_v44 = vsel %vm1053_vm1, %v1838_v36, 0  ;;  %v452_v46 = vld [vmem:[%s2214_s5 + $0x240] sm:$0xff]  ;;  %484 = vperm.xlu0 %1902, %v472_v43   ;;  %v457_v50 = vld [vmem:[%s2214_s5 + $0x268] sm:$0xff]  ;;  %v1830_v54 = vcombine.low %v461_v39, %v465_v40  ;;  %v1800_v30 = vcombine.low %v430_v14, %v434_v15  ;;  %v414_v34 = vld [vmem:[%s2214_s5 + $0x110] sm:$0xff] }
  0x61   : > { %1087 = vmatpush1.bf16.msra.mxu0 %v1772_v8  ;;  %1170 = vmatpush1.bf16.msra.mxu1 %v1774_v9  ;;  %v456_v47 = vld [vmem:[%s2214_s5 + $0x260] sm:$0xff]  ;;  %v473_v51 = vld [vmem:[%s2812_s2 + $0x8] sm:$0xff]  ;;  %v1823_v56 = vcombine.high %v453_v49, %v457_v50  ;;  %v1822_v0 = vcombine.low %v453_v49, %v457_v50  ;;  %v479_v9 = vld [vmem:[%s2812_s2 + $0x38] sm:$0xff] }
  0x62   : > { %1088 = vmatprep.subr.bf16.mxu0 %v1765_v10  ;;  %1171 = vmatprep.subr.bf16.mxu1 %v1767_v11  ;;  %v1821_v55 = vcombine.high %v452_v46, %v456_v47  ;;  %v444_v57 = vld [vmem:[%s2214_s5 + $0x200] sm:$0xff]  ;;  %v445_v59 = vld [vmem:[%s2214_s5 + $0x208] sm:$0xff]  ;;  %v1820_v62 = vcombine.low %v452_v46, %v456_v47  ;;  %v1809_v11 = vcombine.high %v438_v3, %v442_v4  ;;  %v2329_v36 = vld [vmem:[%s2810_s0 + $0x10] ss:$8 sps:$4 sm:$0xff]  }
  0x63   : > { %v448_v58 = vld [vmem:[%s2214_s5 + $0x220] sm:$0xff]  ;;  %v449_v60 = vld [vmem:[%s2214_s5 + $0x228] sm:$0xff]  ;;  %v415_v37 = vld [vmem:[%s2214_s5 + $0x118] sm:$0xff] }
  0x64   : > { %489 = vperm.xlu0 %1902, %v473_v51   ;;  %v476_v61 = vld [vmem:[%s2812_s2 + $0x20] sm:$0xff]  ;;  %v477_v63 = vld [vmem:[%s2812_s2 + $0x28] sm:$0xff]  ;;  %v1813_v1 = vcombine.high %v444_v57, %v448_v58  ;;  %v1815_v2 = vcombine.high %v445_v59, %v449_v60  ;;  %v1812_v8 = vcombine.low %v444_v57, %v448_v58  ;;  %v1814_v10 = vcombine.low %v445_v59, %v449_v60  ;;  %v419_v38 = vld [vmem:[%s2214_s5 + $0x138] sm:$0xff] }
  0x65   : > { %1089 = vmatpush1.bf16.msra.mxu0 %v1764_v16  ;;  %1172 = vmatpush1.bf16.msra.mxu1 %v1766_v17  ;;  %v2297_v12 = vld [vmem:[%s2810_s0] ss:$8 sps:$4 sm:$0xff]   ;;  %v431_v16 = vld [vmem:[%s2214_s5 + $0x198] sm:$0xff]  ;;  %v406_v43 = vld [vmem:[%s2214_s5 + $0xd0] sm:$0xff]  ;;  %v1786_v49 = vcombine.low %v415_v37, %v419_v38 }
  0x66   : > { %1090 = vmatprep.subr.bf16.mxu0 %v1757_v18  ;;  %1173 = vmatprep.subr.bf16.mxu1 %v1759_v19  ;;  %v435_v17 = vld [vmem:[%s2214_s5 + $0x1b8] sm:$0xff]  ;;  %v480_v18 = vld [vmem:[%s2812_s2 + $0x40] sm:$0xff]  ;;  %v1808_v19 = vcombine.low %v438_v3, %v442_v4  ;;  %v481_v20 = vld [vmem:[%s2812_s2 + $0x48] sm:$0xff] }
  0x67   : > { %509 = vperm.xlu1 %1903, %v477_v63   ;;  %v1803_v23 = vcombine.high %v431_v16, %v435_v17  ;;  %v407_v46 = vld [vmem:[%s2214_s5 + $0xd8] sm:$0xff]  ;;  %v402_v53 = vld [vmem:[%s2214_s5 + $0xb0] sm:$0xff] }
  0x68   : > { %504 = vperm.xlu0 %1902, %v476_v61   ;;  %v411_v47 = vld [vmem:[%s2214_s5 + $0xf8] sm:$0xff]  ;;  %v390_v61 = vld [vmem:[%s2214_s5 + $0x50] sm:$0xff] }
  0x69   : > { %1091 = vmatpush1.bf16.msra.mxu0 %v1756_v24  ;;  %1174 = vmatpush1.bf16.msra.mxu1 %v1758_v25  ;;  %v422_v24 = vld [vmem:[%s2214_s5 + $0x150] sm:$0xff]  ;;  %v1779_v51 = vcombine.high %v407_v46, %v411_v47  ;;  %v1778_v58 = vcombine.low %v407_v46, %v411_v47 }
  0x6a   : > { %1092 = vmatprep.subr.bf16.mxu0 %v1749_v26  ;;  %1175 = vmatprep.subr.bf16.mxu1 %v1751_v27  ;;  %v426_v25 = vld [vmem:[%s2214_s5 + $0x170] sm:$0xff]  ;;  %v423_v27 = vld [vmem:[%s2214_s5 + $0x158] sm:$0xff] }
  0x6b   : > { %519 = vperm.xlu1 %1903, %v479_v9   ;;  %v2314_v26 = vld [vmem:[%s2810_s0 + $0x14] ss:$8 sps:$4 sm:$0xff]   ;;  %v1792_v39 = vcombine.low %v422_v24, %v426_v25  ;;  %v1794_v40 = vcombine.low %v423_v27, %v427_v29 }
  0x6c   : > { %514 = vperm.xlu0 %1902, %v478_v7   ;;  %v2362_v63 = vld [vmem:[%s2810_s0 + $0x34] ss:$8 sps:$4 sm:$0xff]  }
  0x6d   : > { %1093 = vmatpush1.bf16.msra.mxu0 %v1748_v31  ;;  %1176 = vmatpush1.bf16.msra.mxu1 %v1750_v32  ;;  %v1802_v31 = vcombine.low %v431_v16, %v435_v17  ;;  %v1793_v32 = vcombine.high %v422_v24, %v426_v25  ;;  %v382_v6 = vld [vmem:[%s2214_s5 + $0x10] sm:$0xff]  ;;  %v383_v9 = vld [vmem:[%s2214_s5 + $0x18] sm:$0xff]  ;;  %v2385_v17 = vld [vmem:[%s2810_s0 + $0x44] ss:$8 sps:$4 sm:$0xff]  }
  0x6e   : > { %1844 = vmatprep.subr.msk.bf16.mxu0 %vm1053_vm1, %v1837_v33  ;;  %1850 = vmatprep.subr.msk.bf16.mxu1 %vm1053_vm1, %v1839_v35  ;;  %v1795_v33 = vcombine.high %v423_v27, %v427_v29  ;;  %v418_v35 = vld [vmem:[%s2214_s5 + $0x130] sm:$0xff]  ;;  %v2399_v29 = vld [vmem:[%s2810_s0 + $0x40] ss:$8 sps:$4 sm:$0xff]  }
  0x6f   : > { %529 = vperm.xlu1 %1903, %v481_v20   ;;  %v1784_v48 = vcombine.low %v414_v34, %v418_v35  ;;  %v386_v7 = vld [vmem:[%s2214_s5 + $0x30] sm:$0xff] }
  0x70   : > { %524 = vperm.xlu0 %1902, %v480_v18   ;;  %v1753_v14 = vcombine.high %v382_v6, %v386_v7  ;;  %v470_v16 = vld [vmem:[%s2214_s5 + $0x2d0] sm:$0x33]  ;;  %v471_v18 = vld [vmem:[%s2214_s5 + $0x2d8] sm:$0x33] }
  0x71   : > { %1103 = vmatpush2.bf16.msra.mxu0 %v1055_v41  ;;  %1186 = vmatpush2.bf16.msra.mxu1 %v1061_v44  ;;  %v1785_v41 = vcombine.high %v414_v34, %v418_v35  ;;  %v410_v44 = vld [vmem:[%s2214_s5 + $0xf0] sm:$0xff]  ;;  %v1842_v24 = vcombine.low %v471_v18, %v471_v18 }
  0x72   : > { %1104 = vmatprep.subr.bf16.mxu0 %v1829_v42  ;;  %1187 = vmatprep.subr.bf16.mxu1 %v1831_v45  ;;  %v1787_v42 = vcombine.high %v415_v37, %v419_v38  ;;  %v2338_v45 = vld [vmem:[%s2810_s0 + $0x24] ss:$8 sps:$4 sm:$0xff]   ;;  %v1777_v50 = vcombine.high %v406_v43, %v410_v44  ;;  %v1776_v57 = vcombine.low %v406_v43, %v410_v44  ;;  %v462_v25 = vld [vmem:[%s2214_s5 + $0x290] sm:$0xff] }
  0x73   : > { %v466_v27 = vld [vmem:[%s2214_s5 + $0x2b0] sm:$0xff]  ;;  %v1073_v34 = vsel %vm1053_vm1, %v1842_v24, 0 }
  0x74   : > { %v454_v37 = vld [vmem:[%s2214_s5 + $0x250] sm:$0xff] }
  0x75   : > { %1105 = vmatpush2.bf16.msra.mxu0 %v1828_v52  ;;  %1188 = vmatpush2.bf16.msra.mxu1 %v1830_v54  ;;  %v398_v52 = vld [vmem:[%s2214_s5 + $0x90] sm:$0xff]  ;;  %v2353_v54 = vld [vmem:[%s2810_s0 + $0x20] ss:$8 sps:$4 sm:$0xff]  }
  0x76   : > { %1106 = vmatprep.subr.bf16.mxu0 %v1821_v55  ;;  %1189 = vmatprep.subr.bf16.mxu1 %v1823_v56  ;;  %v399_v55 = vld [vmem:[%s2214_s5 + $0x98] sm:$0xff]  ;;  %v1769_v59 = vcombine.high %v398_v52, %v402_v53  ;;  %v458_v38 = vld [vmem:[%s2214_s5 + $0x270] sm:$0xff] }
  0x77   : > { %v403_v56 = vld [vmem:[%s2214_s5 + $0xb8] sm:$0xff]  ;;  %v1825_v43 = vcombine.high %v454_v37, %v458_v38  ;;  %v446_v46 = vld [vmem:[%s2214_s5 + $0x210] sm:$0xff] }
  0x78   : > { %v1771_v60 = vcombine.high %v399_v55, %v403_v56  ;;  %v1770_v3 = vcombine.low %v399_v55, %v403_v56  ;;  %v450_v47 = vld [vmem:[%s2214_s5 + $0x230] sm:$0xff] }
  0x79   : > { %1107 = vmatpush2.bf16.msra.mxu0 %v1820_v62  ;;  %1190 = vmatpush2.bf16.msra.mxu1 %v1822_v0  ;;  %v394_v62 = vld [vmem:[%s2214_s5 + $0x70] sm:$0xff]  ;;  %v391_v0 = vld [vmem:[%s2214_s5 + $0x58] sm:$0xff]  ;;  %v1816_v55 = vcombine.low %v446_v46, %v450_v47 }
  0x7a   : > { %1108 = vmatprep.subr.bf16.mxu0 %v1813_v1  ;;  %1191 = vmatprep.subr.bf16.mxu1 %v1815_v2  ;;  %v395_v1 = vld [vmem:[%s2214_s5 + $0x78] sm:$0xff]  ;;  %v1768_v2 = vcombine.low %v398_v52, %v402_v53  ;;  %v1761_v4 = vcombine.high %v390_v61, %v394_v62  ;;  %v1817_v52 = vcombine.high %v446_v46, %v450_v47 }
  0x7b   : > { %v1763_v5 = vcombine.high %v391_v0, %v395_v1 }
  0x7d   : > { %1109 = vmatpush2.bf16.msra.mxu0 %v1812_v8  ;;  %1192 = vmatpush2.bf16.msra.mxu1 %v1814_v10  ;;  %v2377_v8 = vld [vmem:[%s2810_s0 + $0x30] ss:$8 sps:$4 sm:$0xff]  }
  0x7e   : > { %1244 = vmatprep.subr.bf16.mxu0 %v1809_v11  ;;  %1327 = vmatprep.subr.bf16.mxu1 %v1811_v13  ;;  %v387_v10 = vld [vmem:[%s2214_s5 + $0x38] sm:$0xff]  ;;  %v1760_v11 = vcombine.low %v390_v61, %v394_v62  ;;  %v1762_v13 = vcombine.low %v391_v0, %v395_v1 }
  0x7f   : > { %v1755_v15 = vcombine.high %v383_v9, %v387_v10  ;;  %v1754_v20 = vcombine.low %v383_v9, %v387_v10 }
  0x80   : > { %1111 = vmatmul.mubr.bf16.vlgmr.msra.gmra.mxu0 %v2297_v12  ;;  %1194 = vmatmul.mubr.bf16.vlgmr.msra.gmra.mxu1 %v2297_v12 }
  0x81   : > { %1245 = vmatpush1.bf16.msra.mxu0 %v1808_v19  ;;  %1328 = vmatpush1.bf16.msra.mxu1 %v1810_v21  ;;  %v1752_v19 = vcombine.low %v382_v6, %v386_v7  ;;  %v1841_v21 = vcombine.high %v470_v16, %v470_v16 }
  0x82   : > { %1246 = vmatprep.subr.bf16.mxu0 %v1801_v22  ;;  %1329 = vmatprep.subr.bf16.mxu1 %v1803_v23  ;;  %v1840_v22 = vcombine.low %v470_v16, %v470_v16  ;;  %v1843_v23 = vcombine.high %v471_v18, %v471_v18 }
  0x83   : > { %1846 = vmatprep.mubr.msk.bf16.mxu0 %vm1037_vm0, %v2314_v26  ;;  %1852 = vmatprep.mubr.msk.bf16.mxu1 %vm1037_vm0, %v2314_v26 }
  0x85   : > { %1247 = vmatpush1.bf16.msra.mxu0 %v1800_v30  ;;  %1330 = vmatpush1.bf16.msra.mxu1 %v1802_v31  ;;  %v463_v30 = vld [vmem:[%s2214_s5 + $0x298] sm:$0xff] }
  0x86   : > { %1248 = vmatprep.subr.bf16.mxu0 %v1793_v32  ;;  %1331 = vmatprep.subr.bf16.mxu1 %v1795_v33  ;;  %v467_v31 = vld [vmem:[%s2214_s5 + $0x2b8] sm:$0xff]  ;;  %v1067_v32 = vsel %vm1053_vm1, %v1840_v22, 0  ;;  %v1833_v33 = vcombine.high %v462_v25, %v466_v27 }
  0x87   : > { %v1835_v35 = vcombine.high %v463_v30, %v467_v31 }
  0x88   : > { %1121 = vmatmul.mubr.bf16.gmra.mxu0 %v2329_v36  ;;  %1204 = vmatmul.mubr.bf16.gmra.mxu1 %v2329_v36 }
  0x89   : > { %1249 = vmatpush1.bf16.msra.mxu0 %v1792_v39  ;;  %1332 = vmatpush1.bf16.msra.mxu1 %v1794_v40  ;;  %v455_v39 = vld [vmem:[%s2214_s5 + $0x258] sm:$0xff] }
  0x8a   : > { %1250 = vmatprep.subr.bf16.mxu0 %v1785_v41  ;;  %1333 = vmatprep.subr.bf16.mxu1 %v1787_v42  ;;  %v459_v40 = vld [vmem:[%s2214_s5 + $0x278] sm:$0xff]  ;;  %v1832_v41 = vcombine.low %v462_v25, %v466_v27  ;;  %v1834_v42 = vcombine.low %v463_v30, %v467_v31 }
  0x8b   : > { %1847 = vmatprep.mubr.msk.bf16.mxu0 %vm1037_vm0, %v2338_v45  ;;  %1853 = vmatprep.mubr.msk.bf16.mxu1 %vm1037_vm0, %v2338_v45  ;;  %v1827_v44 = vcombine.high %v455_v39, %v459_v40 }
  0x8d   : > { %1251 = vmatpush1.bf16.msra.mxu0 %v1784_v48  ;;  %1334 = vmatpush1.bf16.msra.mxu1 %v1786_v49  ;;  %v447_v48 = vld [vmem:[%s2214_s5 + $0x218] sm:$0xff] }
  0x8e   : > { %1252 = vmatprep.subr.bf16.mxu0 %v1777_v50  ;;  %1335 = vmatprep.subr.bf16.mxu1 %v1779_v51  ;;  %v451_v49 = vld [vmem:[%s2214_s5 + $0x238] sm:$0xff]  ;;  %v1824_v50 = vcombine.low %v454_v37, %v458_v38  ;;  %v1826_v51 = vcombine.low %v455_v39, %v459_v40  ;;  %s1876_s5 = smul.u32 640, %s345_s28 }
  0x8f   : > { %v1819_v53 = vcombine.high %v447_v48, %v451_v49  ;;  %v1818_v56 = vcombine.low %v447_v48, %v451_v49 }
  0x90   : > { %1131 = vmatmul.mubr.bf16.gmra.mxu0 %v2353_v54  ;;  %1214 = vmatmul.mubr.bf16.gmra.mxu1 %v2353_v54  ;;  %s2455_s8 = scalar_lea.vmem [#allocation3], %s1876_s5 }
  0x91   : > { %1253 = vmatpush1.bf16.msra.mxu0 %v1776_v57  ;;  %1336 = vmatpush1.bf16.msra.mxu1 %v1778_v58 }
  0x92   : > { %1254 = vmatprep.subr.bf16.mxu0 %v1769_v59  ;;  %1337 = vmatprep.subr.bf16.mxu1 %v1771_v60 }
  0x93   : > { %1848 = vmatprep.mubr.msk.bf16.mxu0 %vm1037_vm0, %v2362_v63  ;;  %1854 = vmatprep.mubr.msk.bf16.mxu1 %vm1037_vm0, %v2362_v63 }
  0x95   : > { %1255 = vmatpush1.bf16.msra.mxu0 %v1768_v2  ;;  %1338 = vmatpush1.bf16.msra.mxu1 %v1770_v3 }
  0x96   : > { %1256 = vmatprep.subr.bf16.mxu0 %v1761_v4  ;;  %1339 = vmatprep.subr.bf16.mxu1 %v1763_v5 }
  0x98   : > { %1141 = vmatmul.mubr.bf16.gmra.mxu0 %v2377_v8  ;;  %1224 = vmatmul.mubr.bf16.gmra.mxu1 %v2377_v8 }
  0x99   : > { %1257 = vmatpush1.bf16.msra.mxu0 %v1760_v11  ;;  %1340 = vmatpush1.bf16.msra.mxu1 %v1762_v13 }
  0x9a   : > { %1258 = vmatprep.subr.bf16.mxu0 %v1753_v14  ;;  %1341 = vmatprep.subr.bf16.mxu1 %v1755_v15 }
  0x9b   : > { %1849 = vmatprep.mubr.msk.bf16.mxu0 %vm1037_vm0, %v2385_v17  ;;  %1855 = vmatprep.mubr.msk.bf16.mxu1 %vm1037_vm0, %v2385_v17 }
  0x9d   : > { %1259 = vmatpush1.bf16.msra.mxu0 %v1752_v19  ;;  %1342 = vmatpush1.bf16.msra.mxu1 %v1754_v20 }
  0x9e   : > { %1856 = vmatprep.subr.msk.bf16.mxu0 %vm1053_vm1, %v1841_v21  ;;  %1862 = vmatprep.subr.msk.bf16.mxu1 %vm1053_vm1, %v1843_v23 }
  0xa0   : > { %1151 = vmatmul.mubr.bf16.gmra.mxu0 %v2399_v29  ;;  %1234 = vmatmul.mubr.bf16.gmra.mxu1 %v2399_v29 }
  0xa1   : > { %1269 = vmatpush2.bf16.msra.mxu0 %v1067_v32  ;;  %1352 = vmatpush2.bf16.msra.mxu1 %v1073_v34 }
  0xa2   : > { %1270 = vmatprep.subr.bf16.mxu0 %v1833_v33  ;;  %1353 = vmatprep.subr.bf16.mxu1 %v1835_v35 }
  0xa3   : > { %1857 = vmatprep.mubr.msk.bf16.mxu0 %vm1037_vm0, %v2206_v28  ;;  %1863 = vmatprep.mubr.msk.bf16.mxu1 %vm1037_vm0, %v2206_v28 }
  0xa5   : > { %1271 = vmatpush2.bf16.msra.mxu0 %v1832_v41  ;;  %1354 = vmatpush2.bf16.msra.mxu1 %v1834_v42 }
  0xa6   : > { %1272 = vmatprep.subr.bf16.mxu0 %v1825_v43  ;;  %1355 = vmatprep.subr.bf16.mxu1 %v1827_v44 }
  0xa9   : > { %1273 = vmatpush2.bf16.msra.mxu0 %v1824_v50  ;;  %1356 = vmatpush2.bf16.msra.mxu1 %v1826_v51 }
  0xaa   : > { %1274 = vmatprep.subr.bf16.mxu0 %v1817_v52  ;;  %1357 = vmatprep.subr.bf16.mxu1 %v1819_v53 }
  0xad   : > { %1275 = vmatpush2.bf16.msra.mxu0 %v1816_v55  ;;  %1358 = vmatpush2.bf16.msra.mxu1 %v1818_v56 }
  0xb0   : > { %1277 = vmatmul.mubr.bf16.vlgmr.msra.gmra.mxu0 %v2297_v12  ;;  %1360 = vmatmul.mubr.bf16.vlgmr.msra.gmra.mxu1 %v2297_v12 }
  0xb1   : > { %1858 = vmatprep.mubr.msk.bf16.mxu0 %vm1037_vm0, %v2314_v26  ;;  %1864 = vmatprep.mubr.msk.bf16.mxu1 %vm1037_vm0, %v2314_v26 }
  0xb8   : > { %1287 = vmatmul.mubr.bf16.gmra.mxu0 %v2329_v36  ;;  %1370 = vmatmul.mubr.bf16.gmra.mxu1 %v2329_v36 }
  0xb9   : > { %1859 = vmatprep.mubr.msk.bf16.mxu0 %vm1037_vm0, %v2338_v45  ;;  %1865 = vmatprep.mubr.msk.bf16.mxu1 %vm1037_vm0, %v2338_v45 }
  0xc0   : > { %1297 = vmatmul.mubr.bf16.gmra.mxu0 %v2353_v54  ;;  %1380 = vmatmul.mubr.bf16.gmra.mxu1 %v2353_v54 }
  0xc1   : > { %1860 = vmatprep.mubr.msk.bf16.mxu0 %vm1037_vm0, %v2362_v63  ;;  %1866 = vmatprep.mubr.msk.bf16.mxu1 %vm1037_vm0, %v2362_v63 }
  0xc8   : > { %1307 = vmatmul.mubr.bf16.gmra.mxu0 %v2377_v8  ;;  %1390 = vmatmul.mubr.bf16.gmra.mxu1 %v2377_v8 }
  0xc9   : > { %1861 = vmatprep.mubr.msk.bf16.mxu0 %vm1037_vm0, %v2385_v17  ;;  %1867 = vmatprep.mubr.msk.bf16.mxu1 %vm1037_vm0, %v2385_v17 }
  0xd0   : > { %1317 = vmatmul.mubr.bf16.gmra.mxu0 %v2399_v29  ;;  %1400 = vmatmul.mubr.bf16.gmra.mxu1 %v2399_v29 }
  0xd2   : > { %v2461_v62 = vpop.permute.xlu1 %494 }
  0xd6   : > { %v2475_v11 = vpop.permute.xlu1 %499 }
  0xdb   : > { %v2447_v28 = vpop.permute.xlu0 %484 }
  0xdf   : > { %v2453_v57 = vpop.permute.xlu0 %489 }
  0xe2   : > { %v2494_v31 = vpop.permute.xlu1 %509 }
  0xe3   : > { %v2485_v21 = vpop.permute.xlu0 %504 }
  0xe6   : > { %v2514_v51 = vpop.permute.xlu1 %519 }
  0xe7   : > { %v2505_v42 = vpop.permute.xlu0 %514 }
 0x140   : > { %v1112_v12 = vpop.f32.mrf.mxu0  ;;  %v1195_v36 = vpop.f32.mrf.mxu1 }
 0x141   : > { %v1113_v26 = vadd.f32 %v1112_v12, %v2447_v28  ;;  %v1196_v45 = vadd.f32 %v1195_v36, %v2447_v28 }
 0x142   : > { %v1114_v54 = vpop.f32.mrf.mxu0  ;;  %v1197_v59 = vpop.f32.mrf.mxu1 }
 0x143   : > { %1410 = vst [vmem:[%s2455_s8] sm:$0xff] %v1113_v26  ;;  %v1115_v58 = vadd.f32 %v1114_v54, %v2447_v28  ;;  %1412 = vst [vmem:[%s2455_s8 + $0x10] sm:$0xff] %v1196_v45  ;;  %v1198_v60 = vadd.f32 %v1197_v59, %v2447_v28 }
 0x144   : > { %v1116_v61 = vpop.f32.mrf.mxu0  ;;  %v1199_v0 = vpop.f32.mrf.mxu1 }
 0x145   : > { %1411 = vst [vmem:[%s2455_s8 + $0x8] sm:$0xff] %v1115_v58  ;;  %v1117_v63 = vadd.f32 %v1116_v61, %v2453_v57  ;;  %1413 = vst [vmem:[%s2455_s8 + $0x18] sm:$0xff] %v1198_v60  ;;  %v1200_v1 = vadd.f32 %v1199_v0, %v2453_v57  ;;  %v2525_v58 = vpop.permute.xlu0 %524 }
 0x146   : > { %v1118_v2 = vpop.f32.mrf.mxu0  ;;  %v1201_v4 = vpop.f32.mrf.mxu1 }
 0x147   : > { %1418 = vst [vmem:[%s2455_s8 + $0x40] sm:$0xff] %v1117_v63  ;;  %v1119_v3 = vadd.f32 %v1118_v2, %v2453_v57  ;;  %1420 = vst [vmem:[%s2455_s8 + $0x50] sm:$0xff] %v1200_v1  ;;  %v1202_v5 = vadd.f32 %v1201_v4, %v2453_v57 }
 0x148   : > { %v1122_v6 = vpop.f32.mrf.mxu0  ;;  %v1205_v7 = vpop.f32.mrf.mxu1 }
 0x149   : > { %1419 = vst [vmem:[%s2455_s8 + $0x48] sm:$0xff] %v1119_v3  ;;  %v1123_v8 = vadd.f32 %v1122_v6, %v2461_v62  ;;  %1421 = vst [vmem:[%s2455_s8 + $0x58] sm:$0xff] %v1202_v5  ;;  %v1206_v9 = vadd.f32 %v1205_v7, %v2461_v62  ;;  %v2534_v3 = vpop.permute.xlu1 %529 }
 0x14a   : > { %v1124_v10 = vpop.f32.mrf.mxu0  ;;  %v1207_v14 = vpop.f32.mrf.mxu1 }
 0x14b   : > { %1426 = vst [vmem:[%s2455_s8 + $0x80] sm:$0xff] %v1123_v8  ;;  %v1125_v13 = vadd.f32 %v1124_v10, %v2461_v62  ;;  %1428 = vst [vmem:[%s2455_s8 + $0x90] sm:$0xff] %v1206_v9  ;;  %v1208_v15 = vadd.f32 %v1207_v14, %v2461_v62 }
 0x14c   : > { %v1126_v16 = vpop.f32.mrf.mxu0  ;;  %v1209_v17 = vpop.f32.mrf.mxu1 }
 0x14d   : > { %1427 = vst [vmem:[%s2455_s8 + $0x88] sm:$0xff] %v1125_v13  ;;  %v1127_v18 = vadd.f32 %v1126_v16, %v2475_v11  ;;  %1429 = vst [vmem:[%s2455_s8 + $0x98] sm:$0xff] %v1208_v15  ;;  %v1210_v19 = vadd.f32 %v1209_v17, %v2475_v11 }
 0x14e   : > { %v1128_v20 = vpop.f32.mrf.mxu0  ;;  %v1211_v23 = vpop.f32.mrf.mxu1 }
 0x14f   : > { %1434 = vst [vmem:[%s2455_s8 + $0xc0] sm:$0xff] %v1127_v18  ;;  %v1129_v22 = vadd.f32 %v1128_v20, %v2475_v11  ;;  %1436 = vst [vmem:[%s2455_s8 + $0xd0] sm:$0xff] %v1210_v19  ;;  %v1212_v24 = vadd.f32 %v1211_v23, %v2475_v11 }
 0x150   : > { %v1132_v25 = vpop.f32.mrf.mxu0  ;;  %v1215_v27 = vpop.f32.mrf.mxu1 }
 0x151   : > { %1435 = vst [vmem:[%s2455_s8 + $0xc8] sm:$0xff] %v1129_v22  ;;  %v1133_v29 = vadd.f32 %v1132_v25, %v2485_v21  ;;  %1437 = vst [vmem:[%s2455_s8 + $0xd8] sm:$0xff] %v1212_v24  ;;  %v1216_v32 = vadd.f32 %v1215_v27, %v2485_v21 }
 0x152   : > { %v1134_v30 = vpop.f32.mrf.mxu0  ;;  %v1217_v33 = vpop.f32.mrf.mxu1 }
 0x153   : > { %v1135_v34 = vadd.f32 %v1134_v30, %v2485_v21  ;;  %1442 = vst [vmem:[%s2455_s8 + $0x100] sm:$0xff] %v1133_v29  ;;  %v1218_v37 = vadd.f32 %v1217_v33, %v2485_v21  ;;  %1444 = vst [vmem:[%s2455_s8 + $0x110] sm:$0xff] %v1216_v32 }
 0x154   : > { %v1136_v35 = vpop.f32.mrf.mxu0  ;;  %v1219_v38 = vpop.f32.mrf.mxu1 }
 0x155   : > { %v1137_v39 = vadd.f32 %v1136_v35, %v2494_v31  ;;  %1443 = vst [vmem:[%s2455_s8 + $0x108] sm:$0xff] %v1135_v34  ;;  %v1220_v40 = vadd.f32 %v1219_v38, %v2494_v31  ;;  %1445 = vst [vmem:[%s2455_s8 + $0x118] sm:$0xff] %v1218_v37 }
 0x156   : > { %v1138_v41 = vpop.f32.mrf.mxu0  ;;  %v1221_v44 = vpop.f32.mrf.mxu1 }
 0x157   : > { %1450 = vst [vmem:[%s2455_s8 + $0x140] sm:$0xff] %v1137_v39  ;;  %v1139_v43 = vadd.f32 %v1138_v41, %v2494_v31  ;;  %1452 = vst [vmem:[%s2455_s8 + $0x150] sm:$0xff] %v1220_v40  ;;  %v1222_v46 = vadd.f32 %v1221_v44, %v2494_v31 }
 0x158   : > { %v1142_v47 = vpop.f32.mrf.mxu0  ;;  %v1225_v48 = vpop.f32.mrf.mxu1 }
 0x159   : > { %1451 = vst [vmem:[%s2455_s8 + $0x148] sm:$0xff] %v1139_v43  ;;  %v1143_v49 = vadd.f32 %v1142_v47, %v2505_v42  ;;  %1453 = vst [vmem:[%s2455_s8 + $0x158] sm:$0xff] %v1222_v46  ;;  %v1226_v52 = vadd.f32 %v1225_v48, %v2505_v42 }
 0x15a   : > { %v1144_v50 = vpop.f32.mrf.mxu0  ;;  %v1227_v53 = vpop.f32.mrf.mxu1 }
 0x15b   : > { %v1145_v55 = vadd.f32 %v1144_v50, %v2505_v42  ;;  %1458 = vst [vmem:[%s2455_s8 + $0x180] sm:$0xff] %v1143_v49  ;;  %v1228_v12 = vadd.f32 %v1227_v53, %v2505_v42  ;;  %1460 = vst [vmem:[%s2455_s8 + $0x190] sm:$0xff] %v1226_v52 }
 0x15c   : > { %v1146_v56 = vpop.f32.mrf.mxu0  ;;  %v1229_v26 = vpop.f32.mrf.mxu1 }
 0x15d   : > { %v1147_v36 = vadd.f32 %v1146_v56, %v2514_v51  ;;  %1459 = vst [vmem:[%s2455_s8 + $0x188] sm:$0xff] %v1145_v55  ;;  %v1230_v45 = vadd.f32 %v1229_v26, %v2514_v51  ;;  %1461 = vst [vmem:[%s2455_s8 + $0x198] sm:$0xff] %v1228_v12 }
 0x15e   : > { %v1148_v54 = vpop.f32.mrf.mxu0  ;;  %v1231_v60 = vpop.f32.mrf.mxu1 }
 0x15f   : > { %1466 = vst [vmem:[%s2455_s8 + $0x1c0] sm:$0xff] %v1147_v36  ;;  %v1149_v59 = vadd.f32 %v1148_v54, %v2514_v51  ;;  %1468 = vst [vmem:[%s2455_s8 + $0x1d0] sm:$0xff] %v1230_v45  ;;  %v1232_v61 = vadd.f32 %v1231_v60, %v2514_v51 }
 0x160   : > { %v1152_v63 = vpop.f32.mrf.mxu0  ;;  %v1235_v0 = vpop.f32.mrf.mxu1 }
 0x161   : > { %1467 = vst [vmem:[%s2455_s8 + $0x1c8] sm:$0xff] %v1149_v59  ;;  %v1153_v1 = vadd.f32 %v1152_v63, %v2525_v58  ;;  %1469 = vst [vmem:[%s2455_s8 + $0x1d8] sm:$0xff] %v1232_v61  ;;  %v1236_v4 = vadd.f32 %v1235_v0, %v2525_v58 }
 0x162   : > { %v1154_v2 = vpop.f32.mrf.mxu0  ;;  %v1237_v5 = vpop.f32.mrf.mxu1 }
 0x163   : > { %v1155_v6 = vadd.f32 %v1154_v2, %v2525_v58  ;;  %1474 = vst [vmem:[%s2455_s8 + $0x200] sm:$0xff] %v1153_v1  ;;  %v1238_v8 = vadd.f32 %v1237_v5, %v2525_v58  ;;  %1476 = vst [vmem:[%s2455_s8 + $0x210] sm:$0xff] %v1236_v4 }
 0x164   : > { %v1156_v7 = vpop.f32.mrf.mxu0  ;;  %v1239_v9 = vpop.f32.mrf.mxu1 }
 0x165   : > { %v1157_v10 = vadd.f32 %v1156_v7, %v2534_v3  ;;  %1475 = vst [vmem:[%s2455_s8 + $0x208] sm:$0xff] %v1155_v6  ;;  %v1240_v13 = vadd.f32 %v1239_v9, %v2534_v3  ;;  %1477 = vst [vmem:[%s2455_s8 + $0x218] sm:$0xff] %v1238_v8 }
 0x166   : > { %v1158_v14 = vpop.f32.mrf.mxu0  ;;  %v1241_v16 = vpop.f32.mrf.mxu1 }
 0x167   : > { %1482 = vst [vmem:[%s2455_s8 + $0x240] sm:$0xff] %v1157_v10  ;;  %v1159_v15 = vadd.f32 %v1158_v14, %v2534_v3  ;;  %1484 = vst [vmem:[%s2455_s8 + $0x250] sm:$0xff] %v1240_v13  ;;  %v1242_v17 = vadd.f32 %v1241_v16, %v2534_v3 }
 0x169   : > { %1483 = vst [vmem:[%s2455_s8 + $0x248] sm:$0xff] %v1159_v15  ;;  %1485 = vst [vmem:[%s2455_s8 + $0x258] sm:$0xff] %v1242_v17 }
 0x170   : > { %v1278_v18 = vpop.f32.mrf.mxu0  ;;  %v1361_v20 = vpop.f32.mrf.mxu1 }
 0x171   : > { %v1279_v19 = vadd.f32 %v1278_v18, %v2447_v28  ;;  %v1362_v22 = vadd.f32 %v1361_v20, %v2447_v28 }
 0x172   : > { %v1280_v23 = vpop.f32.mrf.mxu0  ;;  %v1363_v25 = vpop.f32.mrf.mxu1 }
 0x173   : > { %1414 = vst [vmem:[%s2455_s8 + $0x20] sm:$0xff] %v1279_v19  ;;  %v1281_v24 = vadd.f32 %v1280_v23, %v2447_v28  ;;  %1416 = vst [vmem:[%s2455_s8 + $0x30] sm:$0xff] %v1362_v22  ;;  %v1364_v27 = vadd.f32 %v1363_v25, %v2447_v28 }
 0x174   : > { %v1282_v29 = vpop.f32.mrf.mxu0  ;;  %v1365_v32 = vpop.f32.mrf.mxu1 }
 0x175   : > { %1415 = vst [vmem:[%s2455_s8 + $0x28] sm:$0xff] %v1281_v24  ;;  %v1283_v30 = vadd.f32 %v1282_v29, %v2453_v57  ;;  %1417 = vst [vmem:[%s2455_s8 + $0x38] sm:$0xff] %v1364_v27  ;;  %v1366_v33 = vadd.f32 %v1365_v32, %v2453_v57 }
 0x176   : > { %v1284_v34 = vpop.f32.mrf.mxu0  ;;  %v1367_v37 = vpop.f32.mrf.mxu1 }
 0x177   : > { %1422 = vst [vmem:[%s2455_s8 + $0x60] sm:$0xff] %v1283_v30  ;;  %v1285_v35 = vadd.f32 %v1284_v34, %v2453_v57  ;;  %1424 = vst [vmem:[%s2455_s8 + $0x70] sm:$0xff] %v1366_v33  ;;  %v1368_v28 = vadd.f32 %v1367_v37, %v2453_v57 }
 0x178   : > { %v1288_v38 = vpop.f32.mrf.mxu0  ;;  %v1371_v40 = vpop.f32.mrf.mxu1 }
 0x179   : > { %1423 = vst [vmem:[%s2455_s8 + $0x68] sm:$0xff] %v1285_v35  ;;  %v1289_v39 = vadd.f32 %v1288_v38, %v2461_v62  ;;  %1425 = vst [vmem:[%s2455_s8 + $0x78] sm:$0xff] %v1368_v28  ;;  %v1372_v41 = vadd.f32 %v1371_v40, %v2461_v62  ;;  %v1514_v40 = vld [vmem:[%s2455_s8 + $0x8] sm:$0xff] (%p2002_p5) }
 0x17a   : > { %v1290_v43 = vpop.f32.mrf.mxu0  ;;  %v1373_v46 = vpop.f32.mrf.mxu1  ;;  %1515 = vst [vmem:[%s2641_s20 + $0x8] sm:$0xff] (%p2002_p5), %v1514_v40  ;;  %v1642_v40 = vld [vmem:[%s2455_s8 + $0x208] sm:$0xff] (%p2002_p5) }
 0x17b   : > { %1430 = vst [vmem:[%s2455_s8 + $0xa0] sm:$0xff] %v1289_v39  ;;  %v1291_v44 = vadd.f32 %v1290_v43, %v2461_v62  ;;  %1432 = vst [vmem:[%s2455_s8 + $0xb0] sm:$0xff] %v1372_v41  ;;  %v1374_v57 = vadd.f32 %v1373_v46, %v2461_v62  ;;  %v1518_v41 = vld [vmem:[%s2455_s8 + $0x18] sm:$0xff] (%p2002_p5)  ;;  %v1520_v43 = vld [vmem:[%s2455_s8 + $0x20] sm:$0xff] (%p2002_p5) }
 0x17c   : > { %v1292_v47 = vpop.f32.mrf.mxu0  ;;  %v1375_v49 = vpop.f32.mrf.mxu1  ;;  %1519 = vst [vmem:[%s2641_s20 + $0x18] sm:$0xff] (%p2002_p5), %v1518_v41  ;;  %1521 = vst [vmem:[%s2641_s20 + $0x20] sm:$0xff] (%p2002_p5), %v1520_v43  ;;  %v1524_v46 = vld [vmem:[%s2455_s8 + $0x30] sm:$0xff] (%p2002_p5)  ;;  %v1646_v41 = vld [vmem:[%s2455_s8 + $0x218] sm:$0xff] (%p2002_p5) }
 0x17d   : > { %1431 = vst [vmem:[%s2455_s8 + $0xa8] sm:$0xff] %v1291_v44  ;;  %v1293_v48 = vadd.f32 %v1292_v47, %v2475_v11  ;;  %1433 = vst [vmem:[%s2455_s8 + $0xb8] sm:$0xff] %v1374_v57  ;;  %v1376_v50 = vadd.f32 %v1375_v49, %v2475_v11  ;;  %v1522_v44 = vld [vmem:[%s2455_s8 + $0x28] sm:$0xff] (%p2002_p5)  ;;  %v1526_v57 = vld [vmem:[%s2455_s8 + $0x38] sm:$0xff] (%p2002_p5) }
 0x17e   : > { %v1294_v52 = vpop.f32.mrf.mxu0  ;;  %v1377_v55 = vpop.f32.mrf.mxu1  ;;  %1523 = vst [vmem:[%s2641_s20 + $0x28] sm:$0xff] (%p2002_p5), %v1522_v44  ;;  %v1528_v47 = vld [vmem:[%s2455_s8 + $0x40] sm:$0xff] (%p2002_p5)  ;;  %1525 = vst [vmem:[%s2641_s20 + $0x30] sm:$0xff] (%p2002_p5), %v1524_v46  ;;  %v1532_v49 = vld [vmem:[%s2455_s8 + $0x50] sm:$0xff] (%p2002_p5) }
 0x17f   : > { %1438 = vst [vmem:[%s2455_s8 + $0xe0] sm:$0xff] %v1293_v48  ;;  %v1295_v53 = vadd.f32 %v1294_v52, %v2475_v11  ;;  %1440 = vst [vmem:[%s2455_s8 + $0xf0] sm:$0xff] %v1376_v50  ;;  %v1378_v62 = vadd.f32 %v1377_v55, %v2475_v11  ;;  %v1530_v48 = vld [vmem:[%s2455_s8 + $0x48] sm:$0xff] (%p2002_p5)  ;;  %v1534_v50 = vld [vmem:[%s2455_s8 + $0x58] sm:$0xff] (%p2002_p5) }
 0x180   : > { %v1298_v56 = vpop.f32.mrf.mxu0  ;;  %v1381_v26 = vpop.f32.mrf.mxu1  ;;  %1527 = vst [vmem:[%s2641_s20 + $0x38] sm:$0xff] (%p2002_p5), %v1526_v57  ;;  %1529 = vst [vmem:[%s2641_s20 + $0x80] sm:$0xff] (%p2002_p5), %v1528_v47  ;;  %v1536_v52 = vld [vmem:[%s2455_s8 + $0x60] sm:$0xff] (%p2002_p5)  ;;  %v1540_v55 = vld [vmem:[%s2455_s8 + $0x70] sm:$0xff] (%p2002_p5) }
 0x181   : > { %1439 = vst [vmem:[%s2455_s8 + $0xe8] sm:$0xff] %v1295_v53  ;;  %v1299_v12 = vadd.f32 %v1298_v56, %v2485_v21  ;;  %1441 = vst [vmem:[%s2455_s8 + $0xf8] sm:$0xff] %v1378_v62  ;;  %v1382_v36 = vadd.f32 %v1381_v26, %v2485_v21  ;;  %v1538_v53 = vld [vmem:[%s2455_s8 + $0x68] sm:$0xff] (%p2002_p5)  ;;  %v1542_v62 = vld [vmem:[%s2455_s8 + $0x78] sm:$0xff] (%p2002_p5) }
 0x182   : > { %v1300_v45 = vpop.f32.mrf.mxu0  ;;  %v1383_v59 = vpop.f32.mrf.mxu1  ;;  %1531 = vst [vmem:[%s2641_s20 + $0x88] sm:$0xff] (%p2002_p5), %v1530_v48  ;;  %1533 = vst [vmem:[%s2641_s20 + $0x90] sm:$0xff] (%p2002_p5), %v1532_v49  ;;  %v1544_v56 = vld [vmem:[%s2455_s8 + $0x80] sm:$0xff] (%p2002_p5)  ;;  %v1548_v26 = vld [vmem:[%s2455_s8 + $0x90] sm:$0xff] (%p2002_p5) }
 0x183   : > { %1446 = vst [vmem:[%s2455_s8 + $0x120] sm:$0xff] %v1299_v12  ;;  %v1301_v54 = vadd.f32 %v1300_v45, %v2485_v21  ;;  %1448 = vst [vmem:[%s2455_s8 + $0x130] sm:$0xff] %v1382_v36  ;;  %v1384_v11 = vadd.f32 %v1383_v59, %v2485_v21  ;;  %v1546_v12 = vld [vmem:[%s2455_s8 + $0x88] sm:$0xff] (%p2002_p5)  ;;  %v1550_v36 = vld [vmem:[%s2455_s8 + $0x98] sm:$0xff] (%p2002_p5) }
 0x184   : > { %v1302_v60 = vpop.f32.mrf.mxu0  ;;  %v1385_v63 = vpop.f32.mrf.mxu1  ;;  %1535 = vst [vmem:[%s2641_s20 + $0x98] sm:$0xff] (%p2002_p5), %v1534_v50  ;;  %1537 = vst [vmem:[%s2641_s20 + $0xa0] sm:$0xff] (%p2002_p5), %v1536_v52  ;;  %v1552_v45 = vld [vmem:[%s2455_s8 + $0xa0] sm:$0xff] (%p2002_p5)  ;;  %v1556_v59 = vld [vmem:[%s2455_s8 + $0xb0] sm:$0xff] (%p2002_p5) }
 0x185   : > { %1447 = vst [vmem:[%s2455_s8 + $0x128] sm:$0xff] %v1301_v54  ;;  %v1303_v61 = vadd.f32 %v1302_v60, %v2494_v31  ;;  %1449 = vst [vmem:[%s2455_s8 + $0x138] sm:$0xff] %v1384_v11  ;;  %v1386_v0 = vadd.f32 %v1385_v63, %v2494_v31  ;;  %v1554_v54 = vld [vmem:[%s2455_s8 + $0xa8] sm:$0xff] (%p2002_p5)  ;;  %v1558_v11 = vld [vmem:[%s2455_s8 + $0xb8] sm:$0xff] (%p2002_p5) }
 0x186   : > { %v1304_v1 = vpop.f32.mrf.mxu0  ;;  %v1387_v4 = vpop.f32.mrf.mxu1  ;;  %1539 = vst [vmem:[%s2641_s20 + $0xa8] sm:$0xff] (%p2002_p5), %v1538_v53  ;;  %1541 = vst [vmem:[%s2641_s20 + $0xb0] sm:$0xff] (%p2002_p5), %v1540_v55  ;;  %v1560_v60 = vld [vmem:[%s2455_s8 + $0xc0] sm:$0xff] (%p2002_p5)  ;;  %v1564_v63 = vld [vmem:[%s2455_s8 + $0xd0] sm:$0xff] (%p2002_p5) }
 0x187   : > { %1454 = vst [vmem:[%s2455_s8 + $0x160] sm:$0xff] %v1303_v61  ;;  %v1305_v2 = vadd.f32 %v1304_v1, %v2494_v31  ;;  %1456 = vst [vmem:[%s2455_s8 + $0x170] sm:$0xff] %v1386_v0  ;;  %v1388_v21 = vadd.f32 %v1387_v4, %v2494_v31  ;;  %v1562_v61 = vld [vmem:[%s2455_s8 + $0xc8] sm:$0xff] (%p2002_p5)  ;;  %v1566_v0 = vld [vmem:[%s2455_s8 + $0xd8] sm:$0xff] (%p2002_p5) }
 0x188   : > { %v1308_v5 = vpop.f32.mrf.mxu0  ;;  %v1391_v7 = vpop.f32.mrf.mxu1  ;;  %1543 = vst [vmem:[%s2641_s20 + $0xb8] sm:$0xff] (%p2002_p5), %v1542_v62  ;;  %1545 = vst [vmem:[%s2641_s20 + $0x100] sm:$0xff] (%p2002_p5), %v1544_v56  ;;  %v1568_v1 = vld [vmem:[%s2455_s8 + $0xe0] sm:$0xff] (%p2002_p5)  ;;  %v1572_v4 = vld [vmem:[%s2455_s8 + $0xf0] sm:$0xff] (%p2002_p5) }
 0x189   : > { %1455 = vst [vmem:[%s2455_s8 + $0x168] sm:$0xff] %v1305_v2  ;;  %v1309_v6 = vadd.f32 %v1308_v5, %v2505_v42  ;;  %1457 = vst [vmem:[%s2455_s8 + $0x178] sm:$0xff] %v1388_v21  ;;  %v1392_v8 = vadd.f32 %v1391_v7, %v2505_v42  ;;  %v1570_v2 = vld [vmem:[%s2455_s8 + $0xe8] sm:$0xff] (%p2002_p5)  ;;  %v1574_v21 = vld [vmem:[%s2455_s8 + $0xf8] sm:$0xff] (%p2002_p5) }
 0x18a   : > { %v1310_v9 = vpop.f32.mrf.mxu0  ;;  %v1393_v13 = vpop.f32.mrf.mxu1  ;;  %1547 = vst [vmem:[%s2641_s20 + $0x108] sm:$0xff] (%p2002_p5), %v1546_v12  ;;  %1549 = vst [vmem:[%s2641_s20 + $0x110] sm:$0xff] (%p2002_p5), %v1548_v26  ;;  %v1576_v5 = vld [vmem:[%s2455_s8 + $0x100] sm:$0xff] (%p2002_p5)  ;;  %v1580_v7 = vld [vmem:[%s2455_s8 + $0x110] sm:$0xff] (%p2002_p5) }
 0x18b   : > { %1462 = vst [vmem:[%s2455_s8 + $0x1a0] sm:$0xff] %v1309_v6  ;;  %v1311_v10 = vadd.f32 %v1310_v9, %v2505_v42  ;;  %1464 = vst [vmem:[%s2455_s8 + $0x1b0] sm:$0xff] %v1392_v8  ;;  %v1394_v31 = vadd.f32 %v1393_v13, %v2505_v42  ;;  %v1578_v6 = vld [vmem:[%s2455_s8 + $0x108] sm:$0xff] (%p2002_p5)  ;;  %v1582_v8 = vld [vmem:[%s2455_s8 + $0x118] sm:$0xff] (%p2002_p5) }
 0x18c   : > { %v1312_v14 = vpop.f32.mrf.mxu0  ;;  %v1395_v16 = vpop.f32.mrf.mxu1  ;;  %1551 = vst [vmem:[%s2641_s20 + $0x118] sm:$0xff] (%p2002_p5), %v1550_v36  ;;  %1553 = vst [vmem:[%s2641_s20 + $0x120] sm:$0xff] (%p2002_p5), %v1552_v45  ;;  %v1584_v9 = vld [vmem:[%s2455_s8 + $0x120] sm:$0xff] (%p2002_p5)  ;;  %v1588_v13 = vld [vmem:[%s2455_s8 + $0x130] sm:$0xff] (%p2002_p5) }
 0x18d   : > { %1463 = vst [vmem:[%s2455_s8 + $0x1a8] sm:$0xff] %v1311_v10  ;;  %v1313_v15 = vadd.f32 %v1312_v14, %v2514_v51  ;;  %1465 = vst [vmem:[%s2455_s8 + $0x1b8] sm:$0xff] %v1394_v31  ;;  %v1396_v17 = vadd.f32 %v1395_v16, %v2514_v51  ;;  %v1586_v10 = vld [vmem:[%s2455_s8 + $0x128] sm:$0xff] (%p2002_p5)  ;;  %v1590_v31 = vld [vmem:[%s2455_s8 + $0x138] sm:$0xff] (%p2002_p5) }
 0x18e   : > { %v1314_v18 = vpop.f32.mrf.mxu0  ;;  %v1397_v20 = vpop.f32.mrf.mxu1  ;;  %1555 = vst [vmem:[%s2641_s20 + $0x128] sm:$0xff] (%p2002_p5), %v1554_v54  ;;  %1557 = vst [vmem:[%s2641_s20 + $0x130] sm:$0xff] (%p2002_p5), %v1556_v59  ;;  %v1592_v14 = vld [vmem:[%s2455_s8 + $0x140] sm:$0xff] (%p2002_p5)  ;;  %v1596_v16 = vld [vmem:[%s2455_s8 + $0x150] sm:$0xff] (%p2002_p5) }
 0x18f   : > { %1470 = vst [vmem:[%s2455_s8 + $0x1e0] sm:$0xff] %v1313_v15  ;;  %v1315_v19 = vadd.f32 %v1314_v18, %v2514_v51  ;;  %1472 = vst [vmem:[%s2455_s8 + $0x1f0] sm:$0xff] %v1396_v17  ;;  %v1398_v42 = vadd.f32 %v1397_v20, %v2514_v51  ;;  %v1594_v15 = vld [vmem:[%s2455_s8 + $0x148] sm:$0xff] (%p2002_p5)  ;;  %v1598_v17 = vld [vmem:[%s2455_s8 + $0x158] sm:$0xff] (%p2002_p5) }
 0x190   : > { %v1318_v22 = vpop.f32.mrf.mxu0  ;;  %v1401_v24 = vpop.f32.mrf.mxu1  ;;  %1559 = vst [vmem:[%s2641_s20 + $0x138] sm:$0xff] (%p2002_p5), %v1558_v11  ;;  %1561 = vst [vmem:[%s2641_s20 + $0x180] sm:$0xff] (%p2002_p5), %v1560_v60  ;;  %v1600_v18 = vld [vmem:[%s2455_s8 + $0x160] sm:$0xff] (%p2002_p5)  ;;  %v1604_v20 = vld [vmem:[%s2455_s8 + $0x170] sm:$0xff] (%p2002_p5) }
 0x191   : > { %1471 = vst [vmem:[%s2455_s8 + $0x1e8] sm:$0xff] %v1315_v19  ;;  %v1319_v23 = vadd.f32 %v1318_v22, %v2525_v58  ;;  %1473 = vst [vmem:[%s2455_s8 + $0x1f8] sm:$0xff] %v1398_v42  ;;  %v1402_v25 = vadd.f32 %v1401_v24, %v2525_v58  ;;  %v1602_v19 = vld [vmem:[%s2455_s8 + $0x168] sm:$0xff] (%p2002_p5)  ;;  %v1606_v42 = vld [vmem:[%s2455_s8 + $0x178] sm:$0xff] (%p2002_p5) }
 0x192   : > { %v1320_v27 = vpop.f32.mrf.mxu0  ;;  %v1403_v30 = vpop.f32.mrf.mxu1  ;;  %1563 = vst [vmem:[%s2641_s20 + $0x188] sm:$0xff] (%p2002_p5), %v1562_v61  ;;  %1565 = vst [vmem:[%s2641_s20 + $0x190] sm:$0xff] (%p2002_p5), %v1564_v63  ;;  %v1608_v22 = vld [vmem:[%s2455_s8 + $0x180] sm:$0xff] (%p2002_p5)  ;;  %v1612_v24 = vld [vmem:[%s2455_s8 + $0x190] sm:$0xff] (%p2002_p5) }
 0x193   : > { %1478 = vst [vmem:[%s2455_s8 + $0x220] sm:$0xff] %v1319_v23  ;;  %v1321_v29 = vadd.f32 %v1320_v27, %v2525_v58  ;;  %1480 = vst [vmem:[%s2455_s8 + $0x230] sm:$0xff] %v1402_v25  ;;  %v1404_v51 = vadd.f32 %v1403_v30, %v2525_v58  ;;  %v1512_v58 = vld [vmem:[%s2455_s8] sm:$0xff] (%p2002_p5)  ;;  %v1610_v23 = vld [vmem:[%s2455_s8 + $0x188] sm:$0xff] (%p2002_p5) }
 0x194   : > { %v1322_v32 = vpop.f32.mrf.mxu0  ;;  %v1405_v34 = vpop.f32.mrf.mxu1  ;;  %1513 = vst [vmem:[%s2641_s20] sm:$0xff] (%p2002_p5), %v1512_v58  ;;  %1567 = vst [vmem:[%s2641_s20 + $0x198] sm:$0xff] (%p2002_p5), %v1566_v0  ;;  %v1614_v25 = vld [vmem:[%s2455_s8 + $0x198] sm:$0xff] (%p2002_p5)  ;;  %v1616_v27 = vld [vmem:[%s2455_s8 + $0x1a0] sm:$0xff] (%p2002_p5) }
 0x195   : > { %1479 = vst [vmem:[%s2455_s8 + $0x228] sm:$0xff] %v1321_v29  ;;  %v1323_v33 = vadd.f32 %v1322_v32, %v2534_v3  ;;  %1481 = vst [vmem:[%s2455_s8 + $0x238] sm:$0xff] %v1404_v51  ;;  %v1406_v35 = vadd.f32 %v1405_v34, %v2534_v3  ;;  %1496 = sbr.rel (!%p2002_p5) target bundleno = 435 (0x1b3), region = 59  ;;  %v1618_v29 = vld [vmem:[%s2455_s8 + $0x1a8] sm:$0xff] (%p2002_p5)  ;;  %v1620_v30 = vld [vmem:[%s2455_s8 + $0x1b0] sm:$0xff] (%p2002_p5) }
 0x196   : > { %v1324_v37 = vpop.f32.mrf.mxu0  ;;  %v1407_v38 = vpop.f32.mrf.mxu1  ;;  %1569 = vst [vmem:[%s2641_s20 + $0x1a0] sm:$0xff] (%p2002_p5), %v1568_v1  ;;  %1571 = vst [vmem:[%s2641_s20 + $0x1a8] sm:$0xff] (%p2002_p5), %v1570_v2  ;;  %v1622_v51 = vld [vmem:[%s2455_s8 + $0x1b8] sm:$0xff] (%p2002_p5)  ;;  %v1624_v32 = vld [vmem:[%s2455_s8 + $0x1c0] sm:$0xff] (%p2002_p5) }
 0x197   : > { %1486 = vst [vmem:[%s2455_s8 + $0x260] sm:$0xff] %v1323_v33  ;;  %v1325_v28 = vadd.f32 %v1324_v37, %v2534_v3  ;;  %1488 = vst [vmem:[%s2455_s8 + $0x270] sm:$0xff] %v1406_v35  ;;  %v1408_v39 = vadd.f32 %v1407_v38, %v2534_v3  ;;  %v1516_v3 = vld [vmem:[%s2455_s8 + $0x10] sm:$0xff] (%p2002_p5)  ;;  %v1626_v33 = vld [vmem:[%s2455_s8 + $0x1c8] sm:$0xff] (%p2002_p5) }
 0x198   : > { %1517 = vst [vmem:[%s2641_s20 + $0x10] sm:$0xff] (%p2002_p5), %v1516_v3  ;;  %1573 = vst [vmem:[%s2641_s20 + $0x1b0] sm:$0xff] (%p2002_p5), %v1572_v4  ;;  %v1628_v34 = vld [vmem:[%s2455_s8 + $0x1d0] sm:$0xff] (%p2002_p5)  ;;  %v1630_v35 = vld [vmem:[%s2455_s8 + $0x1d8] sm:$0xff] (%p2002_p5) }
 0x199   : > { %1487 = vst [vmem:[%s2455_s8 + $0x268] sm:$0xff] %v1325_v28  ;;  %1489 = vst [vmem:[%s2455_s8 + $0x278] sm:$0xff] %v1408_v39  ;;  %v1632_v37 = vld [vmem:[%s2455_s8 + $0x1e0] sm:$0xff] (%p2002_p5)  ;;  %v1634_v28 = vld [vmem:[%s2455_s8 + $0x1e8] sm:$0xff] (%p2002_p5) }
 0x19a   : > { %1575 = vst [vmem:[%s2641_s20 + $0x1b8] sm:$0xff] %v1574_v21  ;;  %1577 = vst [vmem:[%s2641_s20 + $0x200] sm:$0xff] %v1576_v5  ;;  %v1636_v38 = vld [vmem:[%s2455_s8 + $0x1f0] sm:$0xff]  ;;  %v1638_v39 = vld [vmem:[%s2455_s8 + $0x1f8] sm:$0xff] }
 0x19b   : > { %1579 = vst [vmem:[%s2641_s20 + $0x208] sm:$0xff] %v1578_v6  ;;  %1581 = vst [vmem:[%s2641_s20 + $0x210] sm:$0xff] %v1580_v7  ;;  %v1640_v58 = vld [vmem:[%s2455_s8 + $0x200] sm:$0xff]  ;;  %v1644_v3 = vld [vmem:[%s2455_s8 + $0x210] sm:$0xff] }
 0x19c   : > { %1583 = vst [vmem:[%s2641_s20 + $0x218] sm:$0xff] %v1582_v8  ;;  %1585 = vst [vmem:[%s2641_s20 + $0x220] sm:$0xff] %v1584_v9  ;;  %v1648_v43 = vld [vmem:[%s2455_s8 + $0x220] sm:$0xff]  ;;  %v1650_v44 = vld [vmem:[%s2455_s8 + $0x228] sm:$0xff] }
 0x19d   : > { %1587 = vst [vmem:[%s2641_s20 + $0x228] sm:$0xff] %v1586_v10  ;;  %1589 = vst [vmem:[%s2641_s20 + $0x230] sm:$0xff] %v1588_v13  ;;  %v1652_v46 = vld [vmem:[%s2455_s8 + $0x230] sm:$0xff]  ;;  %v1654_v57 = vld [vmem:[%s2455_s8 + $0x238] sm:$0xff] }
 0x19e   : > { %1591 = vst [vmem:[%s2641_s20 + $0x238] sm:$0xff] %v1590_v31  ;;  %1593 = vst [vmem:[%s2641_s20 + $0x280] sm:$0xff] %v1592_v14  ;;  %v1656_v47 = vld [vmem:[%s2455_s8 + $0x240] sm:$0xff]  ;;  %v1658_v48 = vld [vmem:[%s2455_s8 + $0x248] sm:$0xff] }
 0x19f   : > { %1595 = vst [vmem:[%s2641_s20 + $0x288] sm:$0xff] %v1594_v15  ;;  %1597 = vst [vmem:[%s2641_s20 + $0x290] sm:$0xff] %v1596_v16  ;;  %v1660_v49 = vld [vmem:[%s2455_s8 + $0x250] sm:$0xff]  ;;  %v1662_v50 = vld [vmem:[%s2455_s8 + $0x258] sm:$0xff] }
 0x1a0   : > { %1599 = vst [vmem:[%s2641_s20 + $0x298] sm:$0xff] %v1598_v17  ;;  %1601 = vst [vmem:[%s2641_s20 + $0x2a0] sm:$0xff] %v1600_v18  ;;  %v1664_v52 = vld [vmem:[%s2455_s8 + $0x260] sm:$0xff]  ;;  %v1666_v53 = vld [vmem:[%s2455_s8 + $0x268] sm:$0xff] }
 0x1a1   : > { %1603 = vst [vmem:[%s2641_s20 + $0x2a8] sm:$0xff] %v1602_v19  ;;  %1605 = vst [vmem:[%s2641_s20 + $0x2b0] sm:$0xff] %v1604_v20  ;;  %v1668_v55 = vld [vmem:[%s2455_s8 + $0x270] sm:$0xff]  ;;  %v1670_v62 = vld [vmem:[%s2455_s8 + $0x278] sm:$0xff] }
 0x1a2   : > { %1607 = vst [vmem:[%s2641_s20 + $0x2b8] sm:$0xff] %v1606_v42  ;;  %1609 = vst [vmem:[%s2641_s20 + $0x300] sm:$0xff] %v1608_v22 }
 0x1a3   : > { %1611 = vst [vmem:[%s2641_s20 + $0x308] sm:$0xff] %v1610_v23  ;;  %1613 = vst [vmem:[%s2641_s20 + $0x310] sm:$0xff] %v1612_v24 }
 0x1a4   : > { %1615 = vst [vmem:[%s2641_s20 + $0x318] sm:$0xff] %v1614_v25  ;;  %1617 = vst [vmem:[%s2641_s20 + $0x320] sm:$0xff] %v1616_v27 }
 0x1a5   : > { %1619 = vst [vmem:[%s2641_s20 + $0x328] sm:$0xff] %v1618_v29  ;;  %1621 = vst [vmem:[%s2641_s20 + $0x330] sm:$0xff] %v1620_v30 }
 0x1a6   : > { %1623 = vst [vmem:[%s2641_s20 + $0x338] sm:$0xff] %v1622_v51  ;;  %1625 = vst [vmem:[%s2641_s20 + $0x380] sm:$0xff] %v1624_v32 }
 0x1a7   : > { %1627 = vst [vmem:[%s2641_s20 + $0x388] sm:$0xff] %v1626_v33  ;;  %1629 = vst [vmem:[%s2641_s20 + $0x390] sm:$0xff] %v1628_v34 }
 0x1a8   : > { %1631 = vst [vmem:[%s2641_s20 + $0x398] sm:$0xff] %v1630_v35  ;;  %1633 = vst [vmem:[%s2641_s20 + $0x3a0] sm:$0xff] %v1632_v37 }
 0x1a9   : > { %1635 = vst [vmem:[%s2641_s20 + $0x3a8] sm:$0xff] %v1634_v28  ;;  %1637 = vst [vmem:[%s2641_s20 + $0x3b0] sm:$0xff] %v1636_v38 }
 0x1aa   : > { %1639 = vst [vmem:[%s2641_s20 + $0x3b8] sm:$0xff] %v1638_v39  ;;  %1641 = vst [vmem:[%s2641_s20 + $0x400] sm:$0xff] %v1640_v58 }
 0x1ab   : > { %1643 = vst [vmem:[%s2641_s20 + $0x408] sm:$0xff] %v1642_v40  ;;  %1645 = vst [vmem:[%s2641_s20 + $0x410] sm:$0xff] %v1644_v3 }
 0x1ac   : > { %1647 = vst [vmem:[%s2641_s20 + $0x418] sm:$0xff] %v1646_v41  ;;  %1649 = vst [vmem:[%s2641_s20 + $0x420] sm:$0xff] %v1648_v43 }
 0x1ad   : > { %1651 = vst [vmem:[%s2641_s20 + $0x428] sm:$0xff] %v1650_v44  ;;  %1653 = vst [vmem:[%s2641_s20 + $0x430] sm:$0xff] %v1652_v46 }
 0x1ae   : > { %1655 = vst [vmem:[%s2641_s20 + $0x438] sm:$0xff] %v1654_v57  ;;  %1657 = vst [vmem:[%s2641_s20 + $0x480] sm:$0xff] %v1656_v47 }
 0x1af   : > { %1659 = vst [vmem:[%s2641_s20 + $0x488] sm:$0xff] %v1658_v48  ;;  %1661 = vst [vmem:[%s2641_s20 + $0x490] sm:$0xff] %v1660_v49 }
 0x1b0   : > { %1663 = vst [vmem:[%s2641_s20 + $0x498] sm:$0xff] %v1662_v50  ;;  %1665 = vst [vmem:[%s2641_s20 + $0x4a0] sm:$0xff] %v1664_v52 }
 0x1b1   : > { %1667 = vst [vmem:[%s2641_s20 + $0x4a8] sm:$0xff] %v1666_v53  ;;  %1669 = vst [vmem:[%s2641_s20 + $0x4b0] sm:$0xff] %v1668_v55 }
 0x1b2   : > { %1671 = vst [vmem:[%s2641_s20 + $0x4b8] sm:$0xff] %v1670_v62 }
 0x1b3 PF: > { %p10_p10 = scmp.ge.s32.totalorder %s1989_s16, 4   ;;  %s2815_s12 = smov %s1945_s13 }
 0x1b4   : > { %s2816_s13 = smov %s2000_s19  ;;  %s2817_s14 = smov %s1989_s16 }
 0x1b5   :  { %12 = sbr.rel (!%p10_p10) target bundleno = 2 (0x2), region = 113 }

</bundles_post_ra>
